<compile_context>
chip_gen: v6e
topology: v6e:2x2x1
jax: 0.10.0
libtpu: 0.0.40
codegen_flags: <defaults>
</compile_context>

<pallas_src>
import functools

import jax
import jax.numpy as jnp
from jax.experimental import pallas as pl
from jax.experimental.pallas import tpu as pltpu

NEG_FILL = -1e30
LRELU_SLOPE = 0.01     # nn.LeakyReLU default
BN_EPS = 1e-5          # nn.BatchNorm1d default
LANE = 128

# ---- row indices into the stacked parameter buffers (must match _pack_params) ----
(W_PN, W_PE1_SRC, W_PE1_EDGE, W_ET, W_PN2) = range(5)          # (P, P)   bf16
(G_IH1, G_HH1, G_IH2, G_HH2) = range(4)                        # (P, 3P)  bf16 fused GRU gates
(WV_PE2_DST, WV_PE2_E, WV_PE_DST, WV_PE_SRC) = range(4)        # (P, 1)   bf16 attention columns
(B_PN, B_PE1, B_ET, B_PN2, B_BN_G, B_BN_B, B_PE2, B_PE,
 B_GI1, B_GH1, B_GI2, B_GH2) = range(12)                       # (1, 3P)  f32 bias rows


def _leaky_relu(x):
    return jnp.maximum(x, LRELU_SLOPE * x)


def _elu(x):
    # exp only sees non-positive values -> no overflow on the untaken branch
    return jnp.where(x > 0, x, jnp.exp(jnp.minimum(x, 0.0)) - 1.0)


def _sigmoid(x):
    # numerically-safe logistic (exp argument always <= 0)
    e = jnp.exp(-jnp.abs(x))
    p = 1.0 / (1.0 + e)
    return jnp.where(x >= 0, p, e * p)


def _gnn_kernel(nf_ref, ef_ref, dsrc_ref, ddst_ref, ddst_t_ref,
                w_ref, g_ref, wv_ref, b_ref, out_ref, *, P, stash_lane):
    f32, bf16 = jnp.float32, jnp.bfloat16

    nf = nf_ref[...]            # (N, P)  f32, feature-padded node features
    ef = ef_ref[...]            # (E, P)  f32, feature-padded edge features
    dsrc = dsrc_ref[...]        # (E, N)  bf16 one-hot(src)
    ddst = ddst_ref[...]        # (E, N)  bf16 one-hot(dst)
    ddst_t = ddst_t_ref[...]    # (N, E)  bf16 one-hot(dst)^T (precomputed: no in-kernel .T)

    # softmax destination mask, computed once and reused by both layers
    mask_en = ddst > 0          # (E, N) bool
    neg = jnp.asarray(NEG_FILL, bf16)

    def mmb(a, w):              # bf16 x bf16 -> f32 MXU matmul (all matmuls in the kernel)
        return jnp.dot(a.astype(bf16), w.astype(bf16), preferred_element_type=f32)

    gather_src = lambda x: mmb(dsrc, x)      # (N,F) -> (E,F): rows by edge source
    gather_dst = lambda x: mmb(ddst, x)      # (N,F) -> (E,F): rows by edge destination
    segsum_dst = lambda x: mmb(ddst_t, x)    # (E,F) -> (N,F): sum of edge messages per dst

    bP = lambda i: b_ref[i][:, :P]           # (1, P)  feature-width bias row
    bS = lambda i: b_ref[i][:, 0:1]          # (1, 1)  scalar bias

    def softmax_aggregate(logits, msg):
        """elu( sum_dst( edge_softmax(logits) * msg ) ) with post-aggregation normalization.

        logits: (E,1) f32; msg: (E,P) f32 with lanes >= graph_feat_size zero.
        The softmax denominator rides in a spare zero-padded lane of `weighted`, so it is
        produced by the same (N,E)@(E,P) segment-sum matmul as the numerator."""
        lb = logits.astype(bf16)
        masked = jnp.where(mask_en, lb, neg)                                # (E,N) bf16
        mx_per_dst = jnp.max(masked, axis=0, keepdims=True)                 # (1,N) bf16
        edge_max = jnp.max(jnp.where(mask_en, mx_per_dst, neg),
                           axis=1, keepdims=True).astype(f32)               # (E,1)
        ex = jnp.exp(logits - edge_max)                                     # (E,1) f32
        weighted = ex * msg                                                 # (E,P)
        if stash_lane >= 0:
            lane = jax.lax.broadcasted_iota(jnp.int32, (1, P), 1)
            is_stash = lane == stash_lane                                   # (1,P)
            weighted = jnp.where(is_stash, ex, weighted)                    # stash ex in spare lane
            agg = segsum_dst(weighted)                                      # (N,P)
            denom = agg[:, stash_lane:stash_lane + 1]                       # (N,1)
            agg = jnp.where(is_stash, 0.0, agg)                             # restore zero padding
        else:  # no spare padded lane (graph_feat_size == P): separate skinny segment-sum
            agg = segsum_dst(weighted)
            denom = segsum_dst(ex)
        inv = jnp.where(denom > 0.0, 1.0 / denom, 0.0)                      # zero in-degree guard
        return _elu(agg * inv)                                              # (N,P)

    def gru_relu(x, h, wi, wh, bi, bh):
        """relu(torch.nn.GRUCell(x, h)) with fused (P,3P) gate weights; r/z biases pre-added."""
        gi = mmb(x, g_ref[wi]) + b_ref[bi]                                  # (.,3P)
        gh = mmb(h, g_ref[wh]) + b_ref[bh]                                  # (.,3P)
        r = _sigmoid(gi[:, :P] + gh[:, :P])
        z = _sigmoid(gi[:, P:2 * P] + gh[:, P:2 * P])
        n = jnp.tanh(gi[:, 2 * P:] + r * gh[:, 2 * P:])
        return jnp.maximum((1.0 - z) * n + z * h, 0.0)

    # ---------------- layer 1: GetContext + AttentiveGRU1 ----------------
    hv_new = _leaky_relu(mmb(nf, w_ref[W_PN]) + bP(B_PN))                   # (N, P)
    # project_edge1, src projection pushed ahead of the gather (linear -> commutes)
    he1 = _leaky_relu(gather_src(mmb(nf, w_ref[W_PE1_SRC]))
                      + mmb(ef, w_ref[W_PE1_EDGE]) + bP(B_PE1))             # (E, P)
    # project_edge2: 1-column projections computed per-node/per-edge, gathered as scalars
    logits1 = _leaky_relu(gather_dst(mmb(hv_new, wv_ref[WV_PE2_DST]))
                          + mmb(he1, wv_ref[WV_PE2_E]) + bS(B_PE2))         # (E, 1)
    msg1 = mmb(he1, w_ref[W_ET]) + bP(B_ET)                                 # (E, P)
    ctx1 = softmax_aggregate(logits1, msg1)                                 # (N, P)
    nf1 = gru_relu(ctx1, hv_new, G_IH1, G_HH1, B_GI1, B_GH1)                # (N, P)

    # ---------------- layer 2: GNNLayer + AttentiveGRU2 + BatchNorm ----------------
    logits2 = _leaky_relu(gather_dst(mmb(nf1, wv_ref[WV_PE_DST]))
                          + gather_src(mmb(nf1, wv_ref[WV_PE_SRC])) + bS(B_PE))   # (E, 1)
    hv_proj = mmb(nf1, w_ref[W_PN2]) + bP(B_PN2)                            # (N, P)
    msg2 = gather_src(hv_proj)                                              # (E, P)
    ctx2 = softmax_aggregate(logits2, msg2)                                 # (N, P)
    gru2 = gru_relu(ctx2, nf1, G_IH2, G_HH2, B_GI2, B_GH2)                  # (N, P)

    # BatchNorm1d, training-mode batch statistics over nodes
    mean = jnp.mean(gru2, axis=0, keepdims=True)
    var = jnp.mean((gru2 - mean) ** 2, axis=0, keepdims=True)
    nf2 = (gru2 - mean) * jax.lax.rsqrt(var + BN_EPS) * bP(B_BN_G) + bP(B_BN_B)

    # sum_node_feats = GetContext output + GNNLayer output  (num_layers=2)
    out_ref[...] = nf1 + nf2


def _round_up(x, m):
    return ((x + m - 1) // m) * m


def _pack_params(params, P):
    """Zero-pad every weight/bias to the shared padded feature width P, cast weights to bf16,
    fuse GRU gate weights/biases, and stack into 4 buffers."""
    f32, bf16 = jnp.float32, jnp.bfloat16
    threeP = 3 * P

    def padw(w):                              # (in, out) -> (P, P)
        w = jnp.asarray(w, f32)
        return jnp.pad(w, ((0, P - w.shape[0]), (0, P - w.shape[1])))

    def padcol(w):                            # (in, 1) -> (P, 1)
        w = jnp.asarray(w, f32)
        return jnp.pad(w, ((0, P - w.shape[0]), (0, 0)))

    def padb(b, width):                       # (F,) -> (1, width)
        b = jnp.reshape(jnp.asarray(b, f32), (1, -1))
        return jnp.pad(b, ((0, 0), (0, width - b.shape[1])))

    w_stack = jnp.stack([padw(params["w_pn"]), padw(params["w_pe1_src"]),
                         padw(params["w_pe1_edge"]), padw(params["w_et"]),
                         padw(params["w_pn2"])]).astype(bf16)               # (5, P, P)

    def fuse_w(r, z, n):                      # fused (P, 3P) gate matrix [r | z | n]
        return jnp.concatenate([padw(r), padw(z), padw(n)], axis=1)

    g_stack = jnp.stack([
        fuse_w(params["w_ih1_r"], params["w_ih1_z"], params["w_ih1_n"]),
        fuse_w(params["w_hh1_r"], params["w_hh1_z"], params["w_hh1_n"]),
        fuse_w(params["w_ih2_r"], params["w_ih2_z"], params["w_ih2_n"]),
        fuse_w(params["w_hh2_r"], params["w_hh2_z"], params["w_hh2_n"]),
    ]).astype(bf16)                                                         # (4, P, 3P)

    wv_stack = jnp.stack([padcol(params["w_pe2_dst"]), padcol(params["w_pe2_e"]),
                          padcol(params["w_pe_dst"]), padcol(params["w_pe_src"])
                          ]).astype(bf16)                                   # (4, P, 1)

    def fused_bi(tag):                        # input-side fused bias: [bi_r+bh_r | bi_z+bh_z | bi_n]
        return jnp.concatenate([
            padb(jnp.asarray(params[f"b_ih{tag}_r"], f32)
                 + jnp.asarray(params[f"b_hh{tag}_r"], f32), P),
            padb(jnp.asarray(params[f"b_ih{tag}_z"], f32)
                 + jnp.asarray(params[f"b_hh{tag}_z"], f32), P),
            padb(params[f"b_ih{tag}_n"], P)], axis=1)

    def fused_bh(tag):                        # hidden-side fused bias: [0 | 0 | bh_n]
        return jnp.concatenate([jnp.zeros((1, 2 * P), f32),
                                padb(params[f"b_hh{tag}_n"], P)], axis=1)

    b_stack = jnp.stack([
        padb(params["b_pn"], threeP), padb(params["b_pe1"], threeP),
        padb(params["b_et"], threeP), padb(params["b_pn2"], threeP),
        padb(params["bn_gamma"], threeP), padb(params["bn_beta"], threeP),
        padb(params["b_pe2"], threeP), padb(params["b_pe"], threeP),
        fused_bi("1"), fused_bh("1"), fused_bi("2"), fused_bh("2"),
    ])                                                                      # (12, 1, 3P)

    return w_stack, g_stack, wv_stack, b_stack


def _vmem_limit_bytes():
    # Generation-aware VMEM budget: physical capacity minus ~20 MiB headroom for Mosaic
    # internal scratch (v7x: 64 MiB -> ~44 MiB; v5e/v6e: 128 MiB -> ~108 MiB).
    cap = 64 * 1024 * 1024
    try:
        info_fn = getattr(pltpu, "get_tpu_info", None)
        if info_fn is not None:
            cap = int(info_fn().vmem_capacity_bytes)
    except Exception:
        pass
    return max(32 * 1024 * 1024, cap - 20 * 1024 * 1024)


def modified_attentive_fp_forward(node_feats, edge_feats, src, dst, params):
    """Forward pass of ModifiedAttentiveFPPredictorV2 (num_layers=2, dropout=0.0).

    node_feats: (N, Fn) f32, edge_feats: (E, Fe) f32, src/dst: (E,) int32 edge endpoints.
    Weights stored (in, out); GRU weights supplied pre-split per gate (r/z/n)."""
    f32, bf16 = jnp.float32, jnp.bfloat16
    N, Fn = node_feats.shape
    E, Fe = edge_feats.shape
    G = params["w_pn"].shape[1]

    # One shared lane-dense padded width for node/edge/hidden features (exact: padded
    # weight rows/cols, biases and gamma/beta are zero, so padded lanes stay zero).
    P = _round_up(max(Fn, Fe, G), LANE)

    nf_p = jnp.pad(jnp.asarray(node_feats, f32), ((0, 0), (0, P - Fn)))
    ef_p = jnp.pad(jnp.asarray(edge_feats, f32), ((0, 0), (0, P - Fe)))

    # bf16 one-hot incidence (0/1 exact in bf16); the transposed copy is precomputed so the
    # kernel never transposes its largest operand.
    node_ids = jnp.arange(N, dtype=jnp.int32)
    dsrc = (src[:, None] == node_ids[None, :]).astype(bf16)     # (E, N)
    ddst = (dst[:, None] == node_ids[None, :]).astype(bf16)     # (E, N)
    ddst_t = (node_ids[:, None] == dst[None, :]).astype(bf16)   # (N, E)

    w_stack, g_stack, wv_stack, b_stack = _pack_params(params, P)

    # spare zero-padded lane used to carry the softmax denominator through the segment-sum
    stash_lane = P - 1 if G < P else -1

    vmem = pl.BlockSpec(memory_space=pltpu.MemorySpace.VMEM)
    kernel = functools.partial(_gnn_kernel, P=P, stash_lane=stash_lane)
    out_p = pl.pallas_call(
        kernel,
        out_shape=jax.ShapeDtypeStruct((N, P), f32),
        in_specs=[vmem] * 9,
        out_specs=vmem,
        compiler_params=pltpu.CompilerParams(vmem_limit_bytes=_vmem_limit_bytes()),
    )(nf_p, ef_p, dsrc, ddst, ddst_t, w_stack, g_stack, wv_stack, b_stack)

    return out_p[:, :G]


def _reference_forward(node_feats, edge_feats, src, dst, params):
    """Pure-JAX index/segment reference mirroring the kernel's bf16 matmul/aggregation
    rounding; used only as a sanity check in __main__."""
    f32, bf16 = jnp.float32, jnp.bfloat16
    N = node_feats.shape[0]
    p = params
    rb = lambda x: x.astype(bf16).astype(f32)
    mm = lambda a, w: jnp.dot(a.astype(bf16), jnp.asarray(w, f32).astype(bf16),
                              preferred_element_type=f32)
    lrelu = lambda x: jnp.maximum(x, LRELU_SLOPE * x)
    elu = lambda x: jnp.where(x > 0, x, jnp.exp(jnp.minimum(x, 0.0)) - 1.0)

    def edge_softmax(logits):                       # (E,) grouped by dst
        lmax = jax.ops.segment_max(logits, dst, num_segments=N)
        ex = jnp.exp(logits - lmax[dst])
        s = jax.ops.segment_sum(rb(ex), dst, num_segments=N)
        return ex / s[dst]

    def segsum(x):                                  # (E, F) -> (N, F)
        return jax.ops.segment_sum(rb(x), dst, num_segments=N)

    def gru_relu(x, h, tag):
        r = jax.nn.sigmoid(mm(x, p[f"w_ih{tag}_r"]) + p[f"b_ih{tag}_r"]
                           + mm(h, p[f"w_hh{tag}_r"]) + p[f"b_hh{tag}_r"])
        z = jax.nn.sigmoid(mm(x, p[f"w_ih{tag}_z"]) + p[f"b_ih{tag}_z"]
                           + mm(h, p[f"w_hh{tag}_z"]) + p[f"b_hh{tag}_z"])
        n = jnp.tanh(mm(x, p[f"w_ih{tag}_n"]) + p[f"b_ih{tag}_n"]
                     + r * (mm(h, p[f"w_hh{tag}_n"]) + p[f"b_hh{tag}_n"]))
        return jax.nn.relu((1.0 - z) * n + z * h)

    nf = jnp.asarray(node_feats, f32)
    ef = jnp.asarray(edge_feats, f32)

    hv_new = lrelu(mm(nf, p["w_pn"]) + p["b_pn"])
    src_hv = rb(nf)[src]
    he1 = lrelu(mm(src_hv, p["w_pe1_src"]) + mm(ef, p["w_pe1_edge"]) + p["b_pe1"])
    dst_hv_new = rb(hv_new)[dst]
    logits1 = lrelu(mm(dst_hv_new, p["w_pe2_dst"]) + mm(he1, p["w_pe2_e"]) + p["b_pe2"])[:, 0]
    a1 = edge_softmax(logits1)[:, None]
    ctx1 = elu(segsum(a1 * (mm(he1, p["w_et"]) + p["b_et"])))
    nf1 = gru_relu(ctx1, hv_new, "1")

    dst_h = rb(nf1)[dst]
    src_h = rb(nf1)[src]
    logits2 = lrelu(mm(dst_h, p["w_pe_dst"]) + mm(src_h, p["w_pe_src"]) + p["b_pe"])[:, 0]
    a2 = edge_softmax(logits2)[:, None]
    hv_proj = mm(nf1, p["w_pn2"]) + p["b_pn2"]
    ctx2 = elu(segsum(a2 * rb(hv_proj)[src]))
    gru2 = gru_relu(ctx2, nf1, "2")

    mean = jnp.mean(gru2, axis=0, keepdims=True)
    var = jnp.mean((gru2 - mean) ** 2, axis=0, keepdims=True)
    nf2 = (gru2 - mean) * jax.lax.rsqrt(var + BN_EPS) * p["bn_gamma"] + p["bn_beta"]
    return nf1 + nf2


if __name__ == "__main__":
    key = jax.random.PRNGKey(0)

    # Small demo shapes: node_feat_size=16, edge_feat_size=8, graph_feat_size=32
    N, Fn, Fe, G = 16, 16, 8, 32
    num_extra_edges = 16

    # Directed ring (every node has an incoming edge) + random extra edges
    ring_src = jnp.arange(N, dtype=jnp.int32)
    ring_dst = (ring_src + 1) % N
    key, k1, k2 = jax.random.split(key, 3)
    extra_src = jax.random.randint(k1, (num_extra_edges,), 0, N, dtype=jnp.int32)
    extra_dst = jax.random.randint(k2, (num_extra_edges,), 0, N, dtype=jnp.int32)
    src = jnp.concatenate([ring_src, extra_src])
    dst = jnp.concatenate([ring_dst, extra_dst])
    E = int(src.shape[0])

    key, kn, ke = jax.random.split(key, 3)
    node_feats = jax.random.normal(kn, (N, Fn), jnp.float32)
    edge_feats = jax.random.normal(ke, (E, Fe), jnp.float32)

    # Synthetic parameters (weights stored (in, out); GRU gate weights pre-split r/z/n)
    param_shapes = {
        "w_pn": (Fn, G), "b_pn": (G,),                                     # GetContext.project_node
        "w_pe1_src": (Fn, G), "w_pe1_edge": (Fe, G), "b_pe1": (G,),        # project_edge1 (split)
        "w_pe2_dst": (G, 1), "w_pe2_e": (G, 1), "b_pe2": (1,),             # project_edge2 (split)
        "w_et": (G, G), "b_et": (G,),                                      # AttentiveGRU1.edge_transform
        "w_ih1_r": (G, G), "w_ih1_z": (G, G), "w_ih1_n": (G, G),
        "b_ih1_r": (G,), "b_ih1_z": (G,), "b_ih1_n": (G,),
        "w_hh1_r": (G, G), "w_hh1_z": (G, G), "w_hh1_n": (G, G),
        "b_hh1_r": (G,), "b_hh1_z": (G,), "b_hh1_n": (G,),
        "w_pe_dst": (G, 1), "w_pe_src": (G, 1), "b_pe": (1,),              # GNNLayer.project_edge (split)
        "w_pn2": (G, G), "b_pn2": (G,),                                    # AttentiveGRU2.project_node
        "w_ih2_r": (G, G), "w_ih2_z": (G, G), "w_ih2_n": (G, G),
        "b_ih2_r": (G,), "b_ih2_z": (G,), "b_ih2_n": (G,),
        "w_hh2_r": (G, G), "w_hh2_z": (G, G), "w_hh2_n": (G, G),
        "b_hh2_r": (G,), "b_hh2_z": (G,), "b_hh2_n": (G,),
    }
    params = {}
    for name in sorted(param_shapes):
        key, sub = jax.random.split(key)
        params[name] = 0.1 * jax.random.normal(sub, param_shapes[name], jnp.float32)
    params["bn_gamma"] = jnp.ones((G,), jnp.float32)   # fresh BatchNorm1d
    params["bn_beta"] = jnp.zeros((G,), jnp.float32)

    out = modified_attentive_fp_forward(node_feats, edge_feats, src, dst, params)
    out = jax.block_until_ready(out)

    assert out.shape == (N, G), out.shape
    assert bool(jnp.all(jnp.isfinite(out)))

    # Sanity check against a pure-JAX reference that mirrors the kernel's bf16 matmul and
    # aggregation rounding (residual differences: softmax normalization order, gather-as-matmul
    # rounding, training-mode BatchNorm amplification of per-feature noise).
    ref = _reference_forward(node_feats, edge_feats, src, dst, params)
    diff = jnp.abs(out - ref)
    max_diff = float(jnp.max(diff))
    mean_diff = float(jnp.mean(diff))
    assert max_diff < 0.5, f"pallas vs reference max abs diff too large: {max_diff}"
    assert mean_diff < 0.05, f"pallas vs reference mean abs diff too large: {mean_diff}"

    print("KERNEL_OK")
</pallas_src>

<mosaic_0001>
module attributes {stable_mosaic.version = 11 : i64} {
  func.func @_gnn_kernel(%arg0: memref<16x128xf32, #tpu.memory_space<vmem>>, %arg1: memref<32x128xf32, #tpu.memory_space<vmem>>, %arg2: memref<32x16xbf16, #tpu.memory_space<vmem>>, %arg3: memref<32x16xbf16, #tpu.memory_space<vmem>>, %arg4: memref<16x32xbf16, #tpu.memory_space<vmem>>, %arg5: memref<5x128x128xbf16, #tpu.memory_space<vmem>>, %arg6: memref<4x128x384xbf16, #tpu.memory_space<vmem>>, %arg7: memref<4x128x1xbf16, #tpu.memory_space<vmem>>, %arg8: memref<12x1x384xf32, #tpu.memory_space<vmem>>, %arg9: memref<16x128xf32, #tpu.memory_space<vmem>>) attributes {dimension_semantics = [], scalar_prefetch = 0 : i64, scratch_operands = 0 : i64, tpu.core_type = #tpu.core_type<tc>} {
    %c0 = arith.constant 0 : index
    %c0_0 = arith.constant 0 : index
    %0 = vector.load %arg0[%c0, %c0_0] : memref<16x128xf32, #tpu.memory_space<vmem>>, vector<16x128xf32>
    %c0_1 = arith.constant 0 : index
    %c0_2 = arith.constant 0 : index
    %1 = vector.load %arg1[%c0_1, %c0_2] : memref<32x128xf32, #tpu.memory_space<vmem>>, vector<32x128xf32>
    %c0_3 = arith.constant 0 : index
    %c0_4 = arith.constant 0 : index
    %2 = vector.load %arg2[%c0_3, %c0_4] : memref<32x16xbf16, #tpu.memory_space<vmem>>, vector<32x16xbf16>
    %c0_5 = arith.constant 0 : index
    %c0_6 = arith.constant 0 : index
    %3 = vector.load %arg3[%c0_5, %c0_6] : memref<32x16xbf16, #tpu.memory_space<vmem>>, vector<32x16xbf16>
    %c0_7 = arith.constant 0 : index
    %c0_8 = arith.constant 0 : index
    %4 = vector.load %arg4[%c0_7, %c0_8] : memref<16x32xbf16, #tpu.memory_space<vmem>>, vector<16x32xbf16>
    %cst = arith.constant 0.000000e+00 : bf16
    %5 = vector.broadcast %cst : bf16 to vector<32x16xbf16>
    %6 = arith.cmpf ogt, %3, %5 : vector<32x16xbf16>
    %c0_9 = arith.constant 0 : index
    %c0_10 = arith.constant 0 : index
    %c0_11 = arith.constant 0 : index
    %7 = vector.load %arg5[%c0_9, %c0_10, %c0_11] : memref<5x128x128xbf16, #tpu.memory_space<vmem>>, vector<1x128x128xbf16>
    %8 = vector.shape_cast %7 : vector<1x128x128xbf16> to vector<128x128xbf16>
    %9 = arith.truncf %0 : vector<16x128xf32> to vector<16x128xbf16>
    %cst_12 = arith.constant dense<0.000000e+00> : vector<16x128xf32>
    %10 = tpu.matmul %9, %8, %cst_12 {dimension_numbers = #tpu.dot_dimension_numbers<[1], [0], [0], [1], [0, 0, 1, 1], [], []>} : vector<16x128xbf16>, vector<128x128xbf16>, vector<16x128xf32> -> vector<16x128xf32>
    %c0_13 = arith.constant 0 : index
    %c0_14 = arith.constant 0 : index
    %c0_15 = arith.constant 0 : index
    %11 = vector.load %arg8[%c0_13, %c0_14, %c0_15] : memref<12x1x384xf32, #tpu.memory_space<vmem>>, vector<1x1x384xf32>
    %12 = vector.shape_cast %11 : vector<1x1x384xf32> to vector<1x384xf32>
    %13 = vector.extract_strided_slice %12 {offsets = [0, 0], sizes = [1, 128], strides = [1, 1]} : vector<1x384xf32> to vector<1x128xf32>
    %14 = vector.broadcast %13 : vector<1x128xf32> to vector<16x128xf32>
    %15 = arith.addf %10, %14 : vector<16x128xf32>
    %cst_16 = arith.constant 0.00999999977 : f32
    %16 = vector.broadcast %cst_16 : f32 to vector<16x128xf32>
    %17 = arith.mulf %16, %15 : vector<16x128xf32>
    %18 = arith.maximumf %15, %17 : vector<16x128xf32>
    %c1 = arith.constant 1 : index
    %c0_17 = arith.constant 0 : index
    %c0_18 = arith.constant 0 : index
    %19 = vector.load %arg5[%c1, %c0_17, %c0_18] : memref<5x128x128xbf16, #tpu.memory_space<vmem>>, vector<1x128x128xbf16>
    %20 = vector.shape_cast %19 : vector<1x128x128xbf16> to vector<128x128xbf16>
    %21 = arith.truncf %0 : vector<16x128xf32> to vector<16x128xbf16>
    %cst_19 = arith.constant dense<0.000000e+00> : vector<16x128xf32>
    %22 = tpu.matmul %21, %20, %cst_19 {dimension_numbers = #tpu.dot_dimension_numbers<[1], [0], [0], [1], [0, 0, 1, 1], [], []>} : vector<16x128xbf16>, vector<128x128xbf16>, vector<16x128xf32> -> vector<16x128xf32>
    %23 = arith.truncf %22 : vector<16x128xf32> to vector<16x128xbf16>
    %cst_20 = arith.constant dense<0.000000e+00> : vector<32x128xf32>
    %24 = tpu.matmul %2, %23, %cst_20 {dimension_numbers = #tpu.dot_dimension_numbers<[1], [0], [0], [1], [0, 0, 1, 1], [], []>} : vector<32x16xbf16>, vector<16x128xbf16>, vector<32x128xf32> -> vector<32x128xf32>
    %c2 = arith.constant 2 : index
    %c0_21 = arith.constant 0 : index
    %c0_22 = arith.constant 0 : index
    %25 = vector.load %arg5[%c2, %c0_21, %c0_22] : memref<5x128x128xbf16, #tpu.memory_space<vmem>>, vector<1x128x128xbf16>
    %26 = vector.shape_cast %25 : vector<1x128x128xbf16> to vector<128x128xbf16>
    %27 = arith.truncf %1 : vector<32x128xf32> to vector<32x128xbf16>
    %cst_23 = arith.constant dense<0.000000e+00> : vector<32x128xf32>
    %28 = tpu.matmul %27, %26, %cst_23 {dimension_numbers = #tpu.dot_dimension_numbers<[1], [0], [0], [1], [0, 0, 1, 1], [], []>} : vector<32x128xbf16>, vector<128x128xbf16>, vector<32x128xf32> -> vector<32x128xf32>
    %29 = arith.addf %24, %28 : vector<32x128xf32>
    %c1_24 = arith.constant 1 : index
    %c0_25 = arith.constant 0 : index
    %c0_26 = arith.constant 0 : index
    %30 = vector.load %arg8[%c1_24, %c0_25, %c0_26] : memref<12x1x384xf32, #tpu.memory_space<vmem>>, vector<1x1x384xf32>
    %31 = vector.shape_cast %30 : vector<1x1x384xf32> to vector<1x384xf32>
    %32 = vector.extract_strided_slice %31 {offsets = [0, 0], sizes = [1, 128], strides = [1, 1]} : vector<1x384xf32> to vector<1x128xf32>
    %33 = vector.broadcast %32 : vector<1x128xf32> to vector<32x128xf32>
    %34 = arith.addf %29, %33 : vector<32x128xf32>
    %cst_27 = arith.constant 0.00999999977 : f32
    %35 = vector.broadcast %cst_27 : f32 to vector<32x128xf32>
    %36 = arith.mulf %35, %34 : vector<32x128xf32>
    %37 = arith.maximumf %34, %36 : vector<32x128xf32>
    %c0_28 = arith.constant 0 : index
    %c0_29 = arith.constant 0 : index
    %c0_30 = arith.constant 0 : index
    %38 = vector.load %arg7[%c0_28, %c0_29, %c0_30] : memref<4x128x1xbf16, #tpu.memory_space<vmem>>, vector<1x128x1xbf16>
    %39 = vector.shape_cast %38 : vector<1x128x1xbf16> to vector<128x1xbf16>
    %40 = arith.truncf %18 : vector<16x128xf32> to vector<16x128xbf16>
    %cst_31 = arith.constant dense<0.000000e+00> : vector<16x1xf32>
    %41 = tpu.matmul %40, %39, %cst_31 {dimension_numbers = #tpu.dot_dimension_numbers<[1], [0], [0], [1], [0, 0, 1, 1], [], []>} : vector<16x128xbf16>, vector<128x1xbf16>, vector<16x1xf32> -> vector<16x1xf32>
    %42 = arith.truncf %41 : vector<16x1xf32> to vector<16x1xbf16>
    %cst_32 = arith.constant dense<0.000000e+00> : vector<32x1xf32>
    %43 = tpu.matmul %3, %42, %cst_32 {dimension_numbers = #tpu.dot_dimension_numbers<[1], [0], [0], [1], [0, 0, 1, 1], [], []>} : vector<32x16xbf16>, vector<16x1xbf16>, vector<32x1xf32> -> vector<32x1xf32>
    %c1_33 = arith.constant 1 : index
    %c0_34 = arith.constant 0 : index
    %c0_35 = arith.constant 0 : index
    %44 = vector.load %arg7[%c1_33, %c0_34, %c0_35] : memref<4x128x1xbf16, #tpu.memory_space<vmem>>, vector<1x128x1xbf16>
    %45 = vector.shape_cast %44 : vector<1x128x1xbf16> to vector<128x1xbf16>
    %46 = arith.truncf %37 : vector<32x128xf32> to vector<32x128xbf16>
    %cst_36 = arith.constant dense<0.000000e+00> : vector<32x1xf32>
    %47 = tpu.matmul %46, %45, %cst_36 {dimension_numbers = #tpu.dot_dimension_numbers<[1], [0], [0], [1], [0, 0, 1, 1], [], []>} : vector<32x128xbf16>, vector<128x1xbf16>, vector<32x1xf32> -> vector<32x1xf32>
    %48 = arith.addf %43, %47 : vector<32x1xf32>
    %c6 = arith.constant 6 : index
    %c0_37 = arith.constant 0 : index
    %c0_38 = arith.constant 0 : index
    %49 = vector.load %arg8[%c6, %c0_37, %c0_38] : memref<12x1x384xf32, #tpu.memory_space<vmem>>, vector<1x1x384xf32>
    %50 = vector.shape_cast %49 : vector<1x1x384xf32> to vector<1x384xf32>
    %51 = vector.extract_strided_slice %50 {offsets = [0, 0], sizes = [1, 1], strides = [1, 1]} : vector<1x384xf32> to vector<1x1xf32>
    %52 = vector.broadcast %51 : vector<1x1xf32> to vector<32x1xf32>
    %53 = arith.addf %48, %52 : vector<32x1xf32>
    %cst_39 = arith.constant 0.00999999977 : f32
    %54 = vector.broadcast %cst_39 : f32 to vector<32x1xf32>
    %55 = arith.mulf %54, %53 : vector<32x1xf32>
    %56 = arith.maximumf %53, %55 : vector<32x1xf32>
    %c3 = arith.constant 3 : index
    %c0_40 = arith.constant 0 : index
    %c0_41 = arith.constant 0 : index
    %57 = vector.load %arg5[%c3, %c0_40, %c0_41] : memref<5x128x128xbf16, #tpu.memory_space<vmem>>, vector<1x128x128xbf16>
    %58 = vector.shape_cast %57 : vector<1x128x128xbf16> to vector<128x128xbf16>
    %59 = arith.truncf %37 : vector<32x128xf32> to vector<32x128xbf16>
    %cst_42 = arith.constant dense<0.000000e+00> : vector<32x128xf32>
    %60 = tpu.matmul %59, %58, %cst_42 {dimension_numbers = #tpu.dot_dimension_numbers<[1], [0], [0], [1], [0, 0, 1, 1], [], []>} : vector<32x128xbf16>, vector<128x128xbf16>, vector<32x128xf32> -> vector<32x128xf32>
    %c2_43 = arith.constant 2 : index
    %c0_44 = arith.constant 0 : index
    %c0_45 = arith.constant 0 : index
    %61 = vector.load %arg8[%c2_43, %c0_44, %c0_45] : memref<12x1x384xf32, #tpu.memory_space<vmem>>, vector<1x1x384xf32>
    %62 = vector.shape_cast %61 : vector<1x1x384xf32> to vector<1x384xf32>
    %63 = vector.extract_strided_slice %62 {offsets = [0, 0], sizes = [1, 128], strides = [1, 1]} : vector<1x384xf32> to vector<1x128xf32>
    %64 = vector.broadcast %63 : vector<1x128xf32> to vector<32x128xf32>
    %65 = arith.addf %60, %64 : vector<32x128xf32>
    %66 = arith.truncf %56 : vector<32x1xf32> to vector<32x1xbf16>
    %cst_46 = arith.constant -1.000260e+30 : bf16
    %67 = vector.shape_cast %66 : vector<32x1xbf16> to vector<32x1xbf16>
    %68 = vector.broadcast %67 : vector<32x1xbf16> to vector<32x16xbf16>
    %69 = vector.broadcast %cst_46 : bf16 to vector<32x16xbf16>
    %70 = arith.select %6, %68, %69 : vector<32x16xi1>, vector<32x16xbf16>
    %cst_47 = arith.constant dense<0xFF80> : vector<16xbf16>
    %71 = vector.multi_reduction <maximumf>, %70, %cst_47 [0] : vector<32x16xbf16> to vector<16xbf16>
    %72 = vector.shape_cast %71 : vector<16xbf16> to vector<1x16xbf16>
    %cst_48 = arith.constant -1.000260e+30 : bf16
    %73 = vector.shape_cast %72 : vector<1x16xbf16> to vector<1x16xbf16>
    %74 = vector.broadcast %73 : vector<1x16xbf16> to vector<32x16xbf16>
    %75 = vector.broadcast %cst_48 : bf16 to vector<32x16xbf16>
    %76 = arith.select %6, %74, %75 : vector<32x16xi1>, vector<32x16xbf16>
    %cst_49 = arith.constant dense<0xFF80> : vector<32xbf16>
    %77 = vector.multi_reduction <maximumf>, %76, %cst_49 [1] : vector<32x16xbf16> to vector<32xbf16>
    %78 = vector.shape_cast %77 : vector<32xbf16> to vector<32x1xbf16>
    %79 = arith.extf %78 : vector<32x1xbf16> to vector<32x1xf32>
    %80 = arith.subf %56, %79 : vector<32x1xf32>
    %81 = math.exp %80 : vector<32x1xf32>
    %82 = vector.broadcast %81 : vector<32x1xf32> to vector<32x128xf32>
    %83 = arith.mulf %82, %65 : vector<32x128xf32>
    %84 = tpu.iota {dimensions = array<i32: 1>} : vector<1x128xi32>
    %c127_i32 = arith.constant 127 : i32
    %85 = vector.broadcast %c127_i32 : i32 to vector<1x128xi32>
    %86 = arith.cmpi eq, %84, %85 : vector<1x128xi32>
    %87 = vector.shape_cast %86 : vector<1x128xi1> to vector<1x128xi1>
    %88 = vector.broadcast %87 : vector<1x128xi1> to vector<32x128xi1>
    %89 = vector.shape_cast %81 : vector<32x1xf32> to vector<32x1xf32>
    %90 = vector.broadcast %89 : vector<32x1xf32> to vector<32x128xf32>
    %91 = arith.select %88, %90, %83 : vector<32x128xi1>, vector<32x128xf32>
    %92 = arith.truncf %91 : vector<32x128xf32> to vector<32x128xbf16>
    %cst_50 = arith.constant dense<0.000000e+00> : vector<16x128xf32>
    %93 = tpu.matmul %4, %92, %cst_50 {dimension_numbers = #tpu.dot_dimension_numbers<[1], [0], [0], [1], [0, 0, 1, 1], [], []>} : vector<16x32xbf16>, vector<32x128xbf16>, vector<16x128xf32> -> vector<16x128xf32>
    %94 = vector.extract_strided_slice %93 {offsets = [0, 127], sizes = [16, 1], strides = [1, 1]} : vector<16x128xf32> to vector<16x1xf32>
    %cst_51 = arith.constant 0.000000e+00 : f32
    %95 = vector.shape_cast %86 : vector<1x128xi1> to vector<1x128xi1>
    %96 = vector.broadcast %95 : vector<1x128xi1> to vector<16x128xi1>
    %97 = vector.broadcast %cst_51 : f32 to vector<16x128xf32>
    %98 = arith.select %96, %97, %93 : vector<16x128xi1>, vector<16x128xf32>
    %cst_52 = arith.constant 0.000000e+00 : f32
    %99 = vector.broadcast %cst_52 : f32 to vector<16x1xf32>
    %100 = arith.cmpf ogt, %94, %99 : vector<16x1xf32>
    %cst_53 = arith.constant 1.000000e+00 : f32
    %101 = vector.broadcast %cst_53 : f32 to vector<16x1xf32>
    %102 = arith.divf %101, %94 : vector<16x1xf32>
    %cst_54 = arith.constant 0.000000e+00 : f32
    %103 = vector.broadcast %cst_54 : f32 to vector<16x1xf32>
    %104 = arith.select %100, %102, %103 : vector<16x1xi1>, vector<16x1xf32>
    %105 = vector.broadcast %104 : vector<16x1xf32> to vector<16x128xf32>
    %106 = arith.mulf %98, %105 : vector<16x128xf32>
    %cst_55 = arith.constant 0.000000e+00 : f32
    %107 = vector.broadcast %cst_55 : f32 to vector<16x128xf32>
    %108 = arith.cmpf ogt, %106, %107 : vector<16x128xf32>
    %cst_56 = arith.constant 0.000000e+00 : f32
    %109 = vector.broadcast %cst_56 : f32 to vector<16x128xf32>
    %110 = arith.minimumf %106, %109 : vector<16x128xf32>
    %111 = math.exp %110 : vector<16x128xf32>
    %cst_57 = arith.constant 1.000000e+00 : f32
    %112 = vector.broadcast %cst_57 : f32 to vector<16x128xf32>
    %113 = arith.subf %111, %112 : vector<16x128xf32>
    %114 = arith.select %108, %106, %113 : vector<16x128xi1>, vector<16x128xf32>
    %c0_58 = arith.constant 0 : index
    %c0_59 = arith.constant 0 : index
    %c0_60 = arith.constant 0 : index
    %115 = vector.load %arg6[%c0_58, %c0_59, %c0_60] : memref<4x128x384xbf16, #tpu.memory_space<vmem>>, vector<1x128x384xbf16>
    %116 = vector.shape_cast %115 : vector<1x128x384xbf16> to vector<128x384xbf16>
    %117 = arith.truncf %114 : vector<16x128xf32> to vector<16x128xbf16>
    %cst_61 = arith.constant dense<0.000000e+00> : vector<16x384xf32>
    %118 = tpu.matmul %117, %116, %cst_61 {dimension_numbers = #tpu.dot_dimension_numbers<[1], [0], [0], [1], [0, 0, 1, 1], [], []>} : vector<16x128xbf16>, vector<128x384xbf16>, vector<16x384xf32> -> vector<16x384xf32>
    %c8 = arith.constant 8 : index
    %c0_62 = arith.constant 0 : index
    %c0_63 = arith.constant 0 : index
    %119 = vector.load %arg8[%c8, %c0_62, %c0_63] : memref<12x1x384xf32, #tpu.memory_space<vmem>>, vector<1x1x384xf32>
    %120 = vector.shape_cast %119 : vector<1x1x384xf32> to vector<1x384xf32>
    %121 = vector.broadcast %120 : vector<1x384xf32> to vector<16x384xf32>
    %122 = arith.addf %118, %121 : vector<16x384xf32>
    %c1_64 = arith.constant 1 : index
    %c0_65 = arith.constant 0 : index
    %c0_66 = arith.constant 0 : index
    %123 = vector.load %arg6[%c1_64, %c0_65, %c0_66] : memref<4x128x384xbf16, #tpu.memory_space<vmem>>, vector<1x128x384xbf16>
    %124 = vector.shape_cast %123 : vector<1x128x384xbf16> to vector<128x384xbf16>
    %125 = arith.truncf %18 : vector<16x128xf32> to vector<16x128xbf16>
    %cst_67 = arith.constant dense<0.000000e+00> : vector<16x384xf32>
    %126 = tpu.matmul %125, %124, %cst_67 {dimension_numbers = #tpu.dot_dimension_numbers<[1], [0], [0], [1], [0, 0, 1, 1], [], []>} : vector<16x128xbf16>, vector<128x384xbf16>, vector<16x384xf32> -> vector<16x384xf32>
    %c9 = arith.constant 9 : index
    %c0_68 = arith.constant 0 : index
    %c0_69 = arith.constant 0 : index
    %127 = vector.load %arg8[%c9, %c0_68, %c0_69] : memref<12x1x384xf32, #tpu.memory_space<vmem>>, vector<1x1x384xf32>
    %128 = vector.shape_cast %127 : vector<1x1x384xf32> to vector<1x384xf32>
    %129 = vector.broadcast %128 : vector<1x384xf32> to vector<16x384xf32>
    %130 = arith.addf %126, %129 : vector<16x384xf32>
    %131 = vector.extract_strided_slice %122 {offsets = [0, 0], sizes = [16, 128], strides = [1, 1]} : vector<16x384xf32> to vector<16x128xf32>
    %132 = vector.extract_strided_slice %130 {offsets = [0, 0], sizes = [16, 128], strides = [1, 1]} : vector<16x384xf32> to vector<16x128xf32>
    %133 = arith.addf %131, %132 : vector<16x128xf32>
    %134 = math.absf %133 : vector<16x128xf32>
    %cst_70 = arith.constant 0.000000e+00 : f32
    %135 = vector.broadcast %cst_70 : f32 to vector<16x128xf32>
    %136 = arith.subf %135, %134 : vector<16x128xf32>
    %137 = math.exp %136 : vector<16x128xf32>
    %cst_71 = arith.constant 1.000000e+00 : f32
    %138 = vector.broadcast %cst_71 : f32 to vector<16x128xf32>
    %139 = arith.addf %138, %137 : vector<16x128xf32>
    %cst_72 = arith.constant 1.000000e+00 : f32
    %140 = vector.broadcast %cst_72 : f32 to vector<16x128xf32>
    %141 = arith.divf %140, %139 : vector<16x128xf32>
    %cst_73 = arith.constant 0.000000e+00 : f32
    %142 = vector.broadcast %cst_73 : f32 to vector<16x128xf32>
    %143 = arith.cmpf oge, %133, %142 : vector<16x128xf32>
    %144 = arith.mulf %137, %141 : vector<16x128xf32>
    %145 = arith.select %143, %141, %144 : vector<16x128xi1>, vector<16x128xf32>
    %146 = vector.extract_strided_slice %122 {offsets = [0, 128], sizes = [16, 128], strides = [1, 1]} : vector<16x384xf32> to vector<16x128xf32>
    %147 = vector.extract_strided_slice %130 {offsets = [0, 128], sizes = [16, 128], strides = [1, 1]} : vector<16x384xf32> to vector<16x128xf32>
    %148 = arith.addf %146, %147 : vector<16x128xf32>
    %149 = math.absf %148 : vector<16x128xf32>
    %cst_74 = arith.constant 0.000000e+00 : f32
    %150 = vector.broadcast %cst_74 : f32 to vector<16x128xf32>
    %151 = arith.subf %150, %149 : vector<16x128xf32>
    %152 = math.exp %151 : vector<16x128xf32>
    %cst_75 = arith.constant 1.000000e+00 : f32
    %153 = vector.broadcast %cst_75 : f32 to vector<16x128xf32>
    %154 = arith.addf %153, %152 : vector<16x128xf32>
    %cst_76 = arith.constant 1.000000e+00 : f32
    %155 = vector.broadcast %cst_76 : f32 to vector<16x128xf32>
    %156 = arith.divf %155, %154 : vector<16x128xf32>
    %cst_77 = arith.constant 0.000000e+00 : f32
    %157 = vector.broadcast %cst_77 : f32 to vector<16x128xf32>
    %158 = arith.cmpf oge, %148, %157 : vector<16x128xf32>
    %159 = arith.mulf %152, %156 : vector<16x128xf32>
    %160 = arith.select %158, %156, %159 : vector<16x128xi1>, vector<16x128xf32>
    %161 = vector.extract_strided_slice %122 {offsets = [0, 256], sizes = [16, 128], strides = [1, 1]} : vector<16x384xf32> to vector<16x128xf32>
    %162 = vector.extract_strided_slice %130 {offsets = [0, 256], sizes = [16, 128], strides = [1, 1]} : vector<16x384xf32> to vector<16x128xf32>
    %163 = arith.mulf %145, %162 : vector<16x128xf32>
    %164 = arith.addf %161, %163 : vector<16x128xf32>
    %165 = math.tanh %164 : vector<16x128xf32>
    %cst_78 = arith.constant 1.000000e+00 : f32
    %166 = vector.broadcast %cst_78 : f32 to vector<16x128xf32>
    %167 = arith.subf %166, %160 : vector<16x128xf32>
    %168 = arith.mulf %167, %165 : vector<16x128xf32>
    %169 = arith.mulf %160, %18 : vector<16x128xf32>
    %170 = arith.addf %168, %169 : vector<16x128xf32>
    %cst_79 = arith.constant 0.000000e+00 : f32
    %171 = vector.broadcast %cst_79 : f32 to vector<16x128xf32>
    %172 = arith.maximumf %170, %171 : vector<16x128xf32>
    %c2_80 = arith.constant 2 : index
    %c0_81 = arith.constant 0 : index
    %c0_82 = arith.constant 0 : index
    %173 = vector.load %arg7[%c2_80, %c0_81, %c0_82] : memref<4x128x1xbf16, #tpu.memory_space<vmem>>, vector<1x128x1xbf16>
    %174 = vector.shape_cast %173 : vector<1x128x1xbf16> to vector<128x1xbf16>
    %175 = arith.truncf %172 : vector<16x128xf32> to vector<16x128xbf16>
    %cst_83 = arith.constant dense<0.000000e+00> : vector<16x1xf32>
    %176 = tpu.matmul %175, %174, %cst_83 {dimension_numbers = #tpu.dot_dimension_numbers<[1], [0], [0], [1], [0, 0, 1, 1], [], []>} : vector<16x128xbf16>, vector<128x1xbf16>, vector<16x1xf32> -> vector<16x1xf32>
    %177 = arith.truncf %176 : vector<16x1xf32> to vector<16x1xbf16>
    %cst_84 = arith.constant dense<0.000000e+00> : vector<32x1xf32>
    %178 = tpu.matmul %3, %177, %cst_84 {dimension_numbers = #tpu.dot_dimension_numbers<[1], [0], [0], [1], [0, 0, 1, 1], [], []>} : vector<32x16xbf16>, vector<16x1xbf16>, vector<32x1xf32> -> vector<32x1xf32>
    %c3_85 = arith.constant 3 : index
    %c0_86 = arith.constant 0 : index
    %c0_87 = arith.constant 0 : index
    %179 = vector.load %arg7[%c3_85, %c0_86, %c0_87] : memref<4x128x1xbf16, #tpu.memory_space<vmem>>, vector<1x128x1xbf16>
    %180 = vector.shape_cast %179 : vector<1x128x1xbf16> to vector<128x1xbf16>
    %181 = arith.truncf %172 : vector<16x128xf32> to vector<16x128xbf16>
    %cst_88 = arith.constant dense<0.000000e+00> : vector<16x1xf32>
    %182 = tpu.matmul %181, %180, %cst_88 {dimension_numbers = #tpu.dot_dimension_numbers<[1], [0], [0], [1], [0, 0, 1, 1], [], []>} : vector<16x128xbf16>, vector<128x1xbf16>, vector<16x1xf32> -> vector<16x1xf32>
    %183 = arith.truncf %182 : vector<16x1xf32> to vector<16x1xbf16>
    %cst_89 = arith.constant dense<0.000000e+00> : vector<32x1xf32>
    %184 = tpu.matmul %2, %183, %cst_89 {dimension_numbers = #tpu.dot_dimension_numbers<[1], [0], [0], [1], [0, 0, 1, 1], [], []>} : vector<32x16xbf16>, vector<16x1xbf16>, vector<32x1xf32> -> vector<32x1xf32>
    %185 = arith.addf %178, %184 : vector<32x1xf32>
    %c7 = arith.constant 7 : index
    %c0_90 = arith.constant 0 : index
    %c0_91 = arith.constant 0 : index
    %186 = vector.load %arg8[%c7, %c0_90, %c0_91] : memref<12x1x384xf32, #tpu.memory_space<vmem>>, vector<1x1x384xf32>
    %187 = vector.shape_cast %186 : vector<1x1x384xf32> to vector<1x384xf32>
    %188 = vector.extract_strided_slice %187 {offsets = [0, 0], sizes = [1, 1], strides = [1, 1]} : vector<1x384xf32> to vector<1x1xf32>
    %189 = vector.broadcast %188 : vector<1x1xf32> to vector<32x1xf32>
    %190 = arith.addf %185, %189 : vector<32x1xf32>
    %cst_92 = arith.constant 0.00999999977 : f32
    %191 = vector.broadcast %cst_92 : f32 to vector<32x1xf32>
    %192 = arith.mulf %191, %190 : vector<32x1xf32>
    %193 = arith.maximumf %190, %192 : vector<32x1xf32>
    %c4 = arith.constant 4 : index
    %c0_93 = arith.constant 0 : index
    %c0_94 = arith.constant 0 : index
    %194 = vector.load %arg5[%c4, %c0_93, %c0_94] : memref<5x128x128xbf16, #tpu.memory_space<vmem>>, vector<1x128x128xbf16>
    %195 = vector.shape_cast %194 : vector<1x128x128xbf16> to vector<128x128xbf16>
    %196 = arith.truncf %172 : vector<16x128xf32> to vector<16x128xbf16>
    %cst_95 = arith.constant dense<0.000000e+00> : vector<16x128xf32>
    %197 = tpu.matmul %196, %195, %cst_95 {dimension_numbers = #tpu.dot_dimension_numbers<[1], [0], [0], [1], [0, 0, 1, 1], [], []>} : vector<16x128xbf16>, vector<128x128xbf16>, vector<16x128xf32> -> vector<16x128xf32>
    %c3_96 = arith.constant 3 : index
    %c0_97 = arith.constant 0 : index
    %c0_98 = arith.constant 0 : index
    %198 = vector.load %arg8[%c3_96, %c0_97, %c0_98] : memref<12x1x384xf32, #tpu.memory_space<vmem>>, vector<1x1x384xf32>
    %199 = vector.shape_cast %198 : vector<1x1x384xf32> to vector<1x384xf32>
    %200 = vector.extract_strided_slice %199 {offsets = [0, 0], sizes = [1, 128], strides = [1, 1]} : vector<1x384xf32> to vector<1x128xf32>
    %201 = vector.broadcast %200 : vector<1x128xf32> to vector<16x128xf32>
    %202 = arith.addf %197, %201 : vector<16x128xf32>
    %203 = arith.truncf %202 : vector<16x128xf32> to vector<16x128xbf16>
    %cst_99 = arith.constant dense<0.000000e+00> : vector<32x128xf32>
    %204 = tpu.matmul %2, %203, %cst_99 {dimension_numbers = #tpu.dot_dimension_numbers<[1], [0], [0], [1], [0, 0, 1, 1], [], []>} : vector<32x16xbf16>, vector<16x128xbf16>, vector<32x128xf32> -> vector<32x128xf32>
    %205 = arith.truncf %193 : vector<32x1xf32> to vector<32x1xbf16>
    %cst_100 = arith.constant -1.000260e+30 : bf16
    %206 = vector.shape_cast %205 : vector<32x1xbf16> to vector<32x1xbf16>
    %207 = vector.broadcast %206 : vector<32x1xbf16> to vector<32x16xbf16>
    %208 = vector.broadcast %cst_100 : bf16 to vector<32x16xbf16>
    %209 = arith.select %6, %207, %208 : vector<32x16xi1>, vector<32x16xbf16>
    %cst_101 = arith.constant dense<0xFF80> : vector<16xbf16>
    %210 = vector.multi_reduction <maximumf>, %209, %cst_101 [0] : vector<32x16xbf16> to vector<16xbf16>
    %211 = vector.shape_cast %210 : vector<16xbf16> to vector<1x16xbf16>
    %cst_102 = arith.constant -1.000260e+30 : bf16
    %212 = vector.shape_cast %211 : vector<1x16xbf16> to vector<1x16xbf16>
    %213 = vector.broadcast %212 : vector<1x16xbf16> to vector<32x16xbf16>
    %214 = vector.broadcast %cst_102 : bf16 to vector<32x16xbf16>
    %215 = arith.select %6, %213, %214 : vector<32x16xi1>, vector<32x16xbf16>
    %cst_103 = arith.constant dense<0xFF80> : vector<32xbf16>
    %216 = vector.multi_reduction <maximumf>, %215, %cst_103 [1] : vector<32x16xbf16> to vector<32xbf16>
    %217 = vector.shape_cast %216 : vector<32xbf16> to vector<32x1xbf16>
    %218 = arith.extf %217 : vector<32x1xbf16> to vector<32x1xf32>
    %219 = arith.subf %193, %218 : vector<32x1xf32>
    %220 = math.exp %219 : vector<32x1xf32>
    %221 = vector.broadcast %220 : vector<32x1xf32> to vector<32x128xf32>
    %222 = arith.mulf %221, %204 : vector<32x128xf32>
    %223 = tpu.iota {dimensions = array<i32: 1>} : vector<1x128xi32>
    %c127_i32_104 = arith.constant 127 : i32
    %224 = vector.broadcast %c127_i32_104 : i32 to vector<1x128xi32>
    %225 = arith.cmpi eq, %223, %224 : vector<1x128xi32>
    %226 = vector.shape_cast %225 : vector<1x128xi1> to vector<1x128xi1>
    %227 = vector.broadcast %226 : vector<1x128xi1> to vector<32x128xi1>
    %228 = vector.shape_cast %220 : vector<32x1xf32> to vector<32x1xf32>
    %229 = vector.broadcast %228 : vector<32x1xf32> to vector<32x128xf32>
    %230 = arith.select %227, %229, %222 : vector<32x128xi1>, vector<32x128xf32>
    %231 = arith.truncf %230 : vector<32x128xf32> to vector<32x128xbf16>
    %cst_105 = arith.constant dense<0.000000e+00> : vector<16x128xf32>
    %232 = tpu.matmul %4, %231, %cst_105 {dimension_numbers = #tpu.dot_dimension_numbers<[1], [0], [0], [1], [0, 0, 1, 1], [], []>} : vector<16x32xbf16>, vector<32x128xbf16>, vector<16x128xf32> -> vector<16x128xf32>
    %233 = vector.extract_strided_slice %232 {offsets = [0, 127], sizes = [16, 1], strides = [1, 1]} : vector<16x128xf32> to vector<16x1xf32>
    %cst_106 = arith.constant 0.000000e+00 : f32
    %234 = vector.shape_cast %225 : vector<1x128xi1> to vector<1x128xi1>
    %235 = vector.broadcast %234 : vector<1x128xi1> to vector<16x128xi1>
    %236 = vector.broadcast %cst_106 : f32 to vector<16x128xf32>
    %237 = arith.select %235, %236, %232 : vector<16x128xi1>, vector<16x128xf32>
    %cst_107 = arith.constant 0.000000e+00 : f32
    %238 = vector.broadcast %cst_107 : f32 to vector<16x1xf32>
    %239 = arith.cmpf ogt, %233, %238 : vector<16x1xf32>
    %cst_108 = arith.constant 1.000000e+00 : f32
    %240 = vector.broadcast %cst_108 : f32 to vector<16x1xf32>
    %241 = arith.divf %240, %233 : vector<16x1xf32>
    %cst_109 = arith.constant 0.000000e+00 : f32
    %242 = vector.broadcast %cst_109 : f32 to vector<16x1xf32>
    %243 = arith.select %239, %241, %242 : vector<16x1xi1>, vector<16x1xf32>
    %244 = vector.broadcast %243 : vector<16x1xf32> to vector<16x128xf32>
    %245 = arith.mulf %237, %244 : vector<16x128xf32>
    %cst_110 = arith.constant 0.000000e+00 : f32
    %246 = vector.broadcast %cst_110 : f32 to vector<16x128xf32>
    %247 = arith.cmpf ogt, %245, %246 : vector<16x128xf32>
    %cst_111 = arith.constant 0.000000e+00 : f32
    %248 = vector.broadcast %cst_111 : f32 to vector<16x128xf32>
    %249 = arith.minimumf %245, %248 : vector<16x128xf32>
    %250 = math.exp %249 : vector<16x128xf32>
    %cst_112 = arith.constant 1.000000e+00 : f32
    %251 = vector.broadcast %cst_112 : f32 to vector<16x128xf32>
    %252 = arith.subf %250, %251 : vector<16x128xf32>
    %253 = arith.select %247, %245, %252 : vector<16x128xi1>, vector<16x128xf32>
    %c2_113 = arith.constant 2 : index
    %c0_114 = arith.constant 0 : index
    %c0_115 = arith.constant 0 : index
    %254 = vector.load %arg6[%c2_113, %c0_114, %c0_115] : memref<4x128x384xbf16, #tpu.memory_space<vmem>>, vector<1x128x384xbf16>
    %255 = vector.shape_cast %254 : vector<1x128x384xbf16> to vector<128x384xbf16>
    %256 = arith.truncf %253 : vector<16x128xf32> to vector<16x128xbf16>
    %cst_116 = arith.constant dense<0.000000e+00> : vector<16x384xf32>
    %257 = tpu.matmul %256, %255, %cst_116 {dimension_numbers = #tpu.dot_dimension_numbers<[1], [0], [0], [1], [0, 0, 1, 1], [], []>} : vector<16x128xbf16>, vector<128x384xbf16>, vector<16x384xf32> -> vector<16x384xf32>
    %c10 = arith.constant 10 : index
    %c0_117 = arith.constant 0 : index
    %c0_118 = arith.constant 0 : index
    %258 = vector.load %arg8[%c10, %c0_117, %c0_118] : memref<12x1x384xf32, #tpu.memory_space<vmem>>, vector<1x1x384xf32>
    %259 = vector.shape_cast %258 : vector<1x1x384xf32> to vector<1x384xf32>
    %260 = vector.broadcast %259 : vector<1x384xf32> to vector<16x384xf32>
    %261 = arith.addf %257, %260 : vector<16x384xf32>
    %c3_119 = arith.constant 3 : index
    %c0_120 = arith.constant 0 : index
    %c0_121 = arith.constant 0 : index
    %262 = vector.load %arg6[%c3_119, %c0_120, %c0_121] : memref<4x128x384xbf16, #tpu.memory_space<vmem>>, vector<1x128x384xbf16>
    %263 = vector.shape_cast %262 : vector<1x128x384xbf16> to vector<128x384xbf16>
    %264 = arith.truncf %172 : vector<16x128xf32> to vector<16x128xbf16>
    %cst_122 = arith.constant dense<0.000000e+00> : vector<16x384xf32>
    %265 = tpu.matmul %264, %263, %cst_122 {dimension_numbers = #tpu.dot_dimension_numbers<[1], [0], [0], [1], [0, 0, 1, 1], [], []>} : vector<16x128xbf16>, vector<128x384xbf16>, vector<16x384xf32> -> vector<16x384xf32>
    %c11 = arith.constant 11 : index
    %c0_123 = arith.constant 0 : index
    %c0_124 = arith.constant 0 : index
    %266 = vector.load %arg8[%c11, %c0_123, %c0_124] : memref<12x1x384xf32, #tpu.memory_space<vmem>>, vector<1x1x384xf32>
    %267 = vector.shape_cast %266 : vector<1x1x384xf32> to vector<1x384xf32>
    %268 = vector.broadcast %267 : vector<1x384xf32> to vector<16x384xf32>
    %269 = arith.addf %265, %268 : vector<16x384xf32>
    %270 = vector.extract_strided_slice %261 {offsets = [0, 0], sizes = [16, 128], strides = [1, 1]} : vector<16x384xf32> to vector<16x128xf32>
    %271 = vector.extract_strided_slice %269 {offsets = [0, 0], sizes = [16, 128], strides = [1, 1]} : vector<16x384xf32> to vector<16x128xf32>
    %272 = arith.addf %270, %271 : vector<16x128xf32>
    %273 = math.absf %272 : vector<16x128xf32>
    %cst_125 = arith.constant 0.000000e+00 : f32
    %274 = vector.broadcast %cst_125 : f32 to vector<16x128xf32>
    %275 = arith.subf %274, %273 : vector<16x128xf32>
    %276 = math.exp %275 : vector<16x128xf32>
    %cst_126 = arith.constant 1.000000e+00 : f32
    %277 = vector.broadcast %cst_126 : f32 to vector<16x128xf32>
    %278 = arith.addf %277, %276 : vector<16x128xf32>
    %cst_127 = arith.constant 1.000000e+00 : f32
    %279 = vector.broadcast %cst_127 : f32 to vector<16x128xf32>
    %280 = arith.divf %279, %278 : vector<16x128xf32>
    %cst_128 = arith.constant 0.000000e+00 : f32
    %281 = vector.broadcast %cst_128 : f32 to vector<16x128xf32>
    %282 = arith.cmpf oge, %272, %281 : vector<16x128xf32>
    %283 = arith.mulf %276, %280 : vector<16x128xf32>
    %284 = arith.select %282, %280, %283 : vector<16x128xi1>, vector<16x128xf32>
    %285 = vector.extract_strided_slice %261 {offsets = [0, 128], sizes = [16, 128], strides = [1, 1]} : vector<16x384xf32> to vector<16x128xf32>
    %286 = vector.extract_strided_slice %269 {offsets = [0, 128], sizes = [16, 128], strides = [1, 1]} : vector<16x384xf32> to vector<16x128xf32>
    %287 = arith.addf %285, %286 : vector<16x128xf32>
    %288 = math.absf %287 : vector<16x128xf32>
    %cst_129 = arith.constant 0.000000e+00 : f32
    %289 = vector.broadcast %cst_129 : f32 to vector<16x128xf32>
    %290 = arith.subf %289, %288 : vector<16x128xf32>
    %291 = math.exp %290 : vector<16x128xf32>
    %cst_130 = arith.constant 1.000000e+00 : f32
    %292 = vector.broadcast %cst_130 : f32 to vector<16x128xf32>
    %293 = arith.addf %292, %291 : vector<16x128xf32>
    %cst_131 = arith.constant 1.000000e+00 : f32
    %294 = vector.broadcast %cst_131 : f32 to vector<16x128xf32>
    %295 = arith.divf %294, %293 : vector<16x128xf32>
    %cst_132 = arith.constant 0.000000e+00 : f32
    %296 = vector.broadcast %cst_132 : f32 to vector<16x128xf32>
    %297 = arith.cmpf oge, %287, %296 : vector<16x128xf32>
    %298 = arith.mulf %291, %295 : vector<16x128xf32>
    %299 = arith.select %297, %295, %298 : vector<16x128xi1>, vector<16x128xf32>
    %300 = vector.extract_strided_slice %261 {offsets = [0, 256], sizes = [16, 128], strides = [1, 1]} : vector<16x384xf32> to vector<16x128xf32>
    %301 = vector.extract_strided_slice %269 {offsets = [0, 256], sizes = [16, 128], strides = [1, 1]} : vector<16x384xf32> to vector<16x128xf32>
    %302 = arith.mulf %284, %301 : vector<16x128xf32>
    %303 = arith.addf %300, %302 : vector<16x128xf32>
    %304 = math.tanh %303 : vector<16x128xf32>
    %cst_133 = arith.constant 1.000000e+00 : f32
    %305 = vector.broadcast %cst_133 : f32 to vector<16x128xf32>
    %306 = arith.subf %305, %299 : vector<16x128xf32>
    %307 = arith.mulf %306, %304 : vector<16x128xf32>
    %308 = arith.mulf %299, %172 : vector<16x128xf32>
    %309 = arith.addf %307, %308 : vector<16x128xf32>
    %cst_134 = arith.constant 0.000000e+00 : f32
    %310 = vector.broadcast %cst_134 : f32 to vector<16x128xf32>
    %311 = arith.maximumf %309, %310 : vector<16x128xf32>
    %cst_135 = arith.constant dense<0.000000e+00> : vector<128xf32>
    %312 = vector.multi_reduction <add>, %311, %cst_135 [0] : vector<16x128xf32> to vector<128xf32>
    %313 = vector.shape_cast %312 : vector<128xf32> to vector<1x128xf32>
    %cst_136 = arith.constant 1.600000e+01 : f32
    %314 = vector.broadcast %cst_136 : f32 to vector<1x128xf32>
    %315 = arith.divf %313, %314 : vector<1x128xf32>
    %316 = vector.broadcast %315 : vector<1x128xf32> to vector<16x128xf32>
    %317 = arith.subf %311, %316 : vector<16x128xf32>
    %318 = arith.mulf %317, %317 : vector<16x128xf32>
    %cst_137 = arith.constant dense<0.000000e+00> : vector<128xf32>
    %319 = vector.multi_reduction <add>, %318, %cst_137 [0] : vector<16x128xf32> to vector<128xf32>
    %320 = vector.shape_cast %319 : vector<128xf32> to vector<1x128xf32>
    %cst_138 = arith.constant 1.600000e+01 : f32
    %321 = vector.broadcast %cst_138 : f32 to vector<1x128xf32>
    %322 = arith.divf %320, %321 : vector<1x128xf32>
    %323 = vector.broadcast %315 : vector<1x128xf32> to vector<16x128xf32>
    %324 = arith.subf %311, %323 : vector<16x128xf32>
    %cst_139 = arith.constant 9.99999974E-6 : f32
    %325 = vector.broadcast %cst_139 : f32 to vector<1x128xf32>
    %326 = arith.addf %322, %325 : vector<1x128xf32>
    %327 = math.rsqrt %326 : vector<1x128xf32>
    %328 = vector.broadcast %327 : vector<1x128xf32> to vector<16x128xf32>
    %329 = arith.mulf %324, %328 : vector<16x128xf32>
    %c4_140 = arith.constant 4 : index
    %c0_141 = arith.constant 0 : index
    %c0_142 = arith.constant 0 : index
    %330 = vector.load %arg8[%c4_140, %c0_141, %c0_142] : memref<12x1x384xf32, #tpu.memory_space<vmem>>, vector<1x1x384xf32>
    %331 = vector.shape_cast %330 : vector<1x1x384xf32> to vector<1x384xf32>
    %332 = vector.extract_strided_slice %331 {offsets = [0, 0], sizes = [1, 128], strides = [1, 1]} : vector<1x384xf32> to vector<1x128xf32>
    %333 = vector.broadcast %332 : vector<1x128xf32> to vector<16x128xf32>
    %334 = arith.mulf %329, %333 : vector<16x128xf32>
    %c5 = arith.constant 5 : index
    %c0_143 = arith.constant 0 : index
    %c0_144 = arith.constant 0 : index
    %335 = vector.load %arg8[%c5, %c0_143, %c0_144] : memref<12x1x384xf32, #tpu.memory_space<vmem>>, vector<1x1x384xf32>
    %336 = vector.shape_cast %335 : vector<1x1x384xf32> to vector<1x384xf32>
    %337 = vector.extract_strided_slice %336 {offsets = [0, 0], sizes = [1, 128], strides = [1, 1]} : vector<1x384xf32> to vector<1x128xf32>
    %338 = vector.broadcast %337 : vector<1x128xf32> to vector<16x128xf32>
    %339 = arith.addf %334, %338 : vector<16x128xf32>
    %340 = arith.addf %172, %339 : vector<16x128xf32>
    %c0_145 = arith.constant 0 : index
    %c0_146 = arith.constant 0 : index
    %341 = vector.load %arg9[%c0_145, %c0_146] : memref<16x128xf32, #tpu.memory_space<vmem>>, vector<16x128xf32>
    tpu.vector_store %arg9[%c0_145, %c0_146], %340 {strides = array<i32>} : memref<16x128xf32, #tpu.memory_space<vmem>>, vector<16x128xf32>,
    return
  }
}

</mosaic_0001>

<bundles_post_ra>
// kernel: tpu_custom_call.1
= control target key start
LH: loop header
LB: loop body
LE: loop exit
PB: predicated region body
PF: predicated region fallthrough
CT: control target
= control target key end

     0   :  { %14 = vsyncpa [#allocation3], 0  ;;  %s4806_s0 = inlined_call_operand.vmem [shape: f32[16,128], index: 0, kind: input, shape index: {}]   ;;  %s4807_s1 = inlined_call_operand.vmem [shape: f32[32,128], index: 1, kind: input, shape index: {}]   ;;  %s4808_s2 = inlined_call_operand.vmem [shape: bf16[32,16], index: 2, kind: input, shape index: {}]   ;;  %s4809_s3 = inlined_call_operand.vmem [shape: bf16[32,16], index: 3, kind: input, shape index: {}]   ;;  %s4810_s4 = inlined_call_operand.vmem [shape: bf16[16,32], index: 4, kind: input, shape index: {}]   ;;  %s4811_s5 = inlined_call_operand.hbm [shape: bf16[5,128,128], index: 5, kind: input, shape index: {}]   ;;  %s4812_s6 = inlined_call_operand.hbm [shape: bf16[4,128,384], index: 6, kind: input, shape index: {}]   ;;  %s4813_s7 = inlined_call_operand.vmem [shape: bf16[4,128,1], index: 7, kind: input, shape index: {}]   ;;  %s4814_s8 = inlined_call_operand.vmem [shape: f32[12,1,384], index: 8, kind: input, shape index: {}]   ;;  %s4815_s9 = inlined_call_operand.hbm [shape: f32[16,128], index: 9, kind: output, shape index: {}]  }
   0x1   :  { %15 = vsyncpa [#allocation6], 0 }
   0x2   :  { %16 = vsyncpa [#allocation4], 0  ;;  %s4213_s30 = smov [#allocation2]  }
   0x3   :  { %s32_s10 = sshll.u32 %s4213_s30, 4  ;;  %s33_s10 = int_to_ptr.vmem [resolvable:$true] %s32_s10 }
   0x4   :  { %s4155_s11 = scalar_lea.vmem %s33_s10, 5120  ;;  %p4160_p1 = scmp.lt.s32.totalorder %s33_s10, %s33_s10 }
   0x5   :  { %p4156_p0 = scmp.ne.s32.totalorder %s33_s10, %s4155_s11  ;;  %p4161_p2 = scmp.lt.s32.totalorder %s4155_s11, %s4155_s11 }
   0x7   :  { %p4162_p3 = por %p4161_p2, %p4160_p1 }
   0x9   :  { %p4163_p4 = pnand %p4162_p3, %p4156_p0 }
   0xb   :  { %4166 = shalt.err (!%p4163_p4)
}
   0xc   :  { %s4214_s12 = smov 64   ;;  %s4215_s13 = smov 4  }
   0xd   :  { %38 = dma.hbm_to_vmem [thread:$0]  %s4811_s5, 5120, %s33_s10, [#allocation3], %s4214_s12, %s4214_s12, %s4215_s13  }
   0xe   :  { %s4216_s16 = smov [#allocation5]  }
   0xf   :  { %s44_s17 = sshll.u32 %s4216_s16, 4  ;;  %s45_s17 = int_to_ptr.vmem [resolvable:$true] %s44_s17 }
  0x10   :  { %s4175_s18 = scalar_lea.vmem %s45_s17, 12288  ;;  %p4180_p6 = scmp.lt.s32.totalorder %s45_s17, %s45_s17 }
  0x11   :  { %p4176_p5 = scmp.ne.s32.totalorder %s45_s17, %s4175_s18  ;;  %p4181_p7 = scmp.lt.s32.totalorder %s4175_s18, %s4175_s18 }
  0x13   :  { %p4182_p8 = por %p4181_p7, %p4180_p6 }
  0x15   :  { %p4183_p9 = pnand %p4182_p8, %p4176_p5 }
  0x17   :  { %4186 = shalt.err (!%p4183_p9)
}
  0x18   :  { %s4217_s19 = smov 192   ;;  %s4218_s20 = smov 12  }
  0x19   :  { %50 = dma.hbm_to_vmem [thread:$0]  %s4812_s6, 12288, %s45_s17, [#allocation6], %s4217_s19, %s4217_s19, %s4218_s20  }
  0x1a   :  { %4207 = dma.done.wait [#allocation3], 5120  }
  0x1b   :  { %4208 = vsyncadd [#allocation3], 4294962176 }
  0x1c   :  { %4209 = dma.done.wait [#allocation6], 12288  }
  0x1d   :  { %4210 = vsyncadd [#allocation6], 4294955008  ;;  %v4219_v0 = vmov 0.0   ;;  %vm4220_vm0 = vmmov 0   ;;  %v3866_v1 = vld [vmem:[#allocation2 + $0x78] sm:$0xff]   ;;  %v3867_v2 = vld [vmem:[#allocation2 + $0x70] sm:$0xff]   ;;  %v103_v51 = vlaneseq }
  0x1e   :  { %3559 = vmatprep.subr.bf16.mxu1 %v4219_v0  ;;  %3539 = vmatprep.subr.bf16.mxu0 %v4219_v0  ;;  %v3868_v3 = vld [vmem:[#allocation2 + $0x68] sm:$0xff]   ;;  %v3872_v4 = vld [vmem:[#allocation2 + $0x38] sm:$0xff]   ;;  %v3874_v5 = vld [vmem:[#allocation2 + $0x30] sm:$0xff]   ;;  %vm434_vm1 = vcmask 130048   ;;  %vm1100_vm7 = vcmask 261120   ;;  %s4225_s10 = smov [#allocation7]  }
  0x1f   :  { %3575 = vmatprep.mubr.msk.bf16.mxu1 %vm4220_vm0, %v4219_v0  ;;  %3555 = vmatprep.mubr.msk.bf16.mxu0 %vm4220_vm0, %v4219_v0  ;;  %v3869_v6 = vld [vmem:[#allocation2 + $0x60] sm:$0xff]   ;;  %v3876_v7 = vld [vmem:[#allocation2 + $0x28] sm:$0xff]   ;;  %v3870_v8 = vld [vmem:[#allocation2 + $0x58] sm:$0xff]   ;;  %v4357_v53 = vshrl.u32 %v103_v51, 7  ;;  %s3127_s11 = sshll.u32 %s4225_s10, 4  ;;  %s3128_s11 = int_to_ptr.vmem [resolvable:$true] %s3127_s11 }
  0x20   :  { %3560 = vmatpush3.bf16.msra.mxu1 %v3866_v1  ;;  %3540 = vmatpush3.bf16.msra.mxu0 %v3872_v4  ;;  %v3877_v9 = vld [vmem:[#allocation2 + $0x20] sm:$0xff]   ;;  %v3871_v10 = vld [vmem:[#allocation2 + $0x50] sm:$0xff]   ;;  %v3878_v11 = vld [vmem:[#allocation2 + $0x18] sm:$0xff]   ;;  %p4192_p11 = scmp.lt.s32.totalorder %s3128_s11, %s3128_s11 }
  0x21   :  { %3561 = vmatprep.subr.bf16.mxu1 %v4219_v0  ;;  %3541 = vmatprep.subr.bf16.mxu0 %v4219_v0  ;;  %v3873_v12 = vld [vmem:[#allocation2 + $0x48] sm:$0xff]   ;;  %v3879_v13 = vld [vmem:[#allocation2 + $0x10] sm:$0xff]   ;;  %v3875_v14 = vld [vmem:[#allocation2 + $0x40] sm:$0xff]   ;;  %v4364_v55 = vsub.s32 0, %v4357_v53 }
  0x22   :  { %v64_v15 = vld [vmem:[%s4806_s0] sm:$0xff]  ;;  %v65_v16 = vld [vmem:[%s4806_s0 + $0x8] sm:$0xff]  ;;  %v3882_v20 = vld [vmem:[#allocation2 + $0xb8] sm:$0xff]  }
  0x23   :  { %v3880_v17 = vld [vmem:[#allocation2 + $0x8] sm:$0xff]   ;;  %v100_v18 = vpack.c.bf16 %v65_v16, %v64_v15  ;;  %v3881_v19 = vld [vmem:[#allocation2] sm:$0xff]   ;;  %v3883_v21 = vld [vmem:[#allocation2 + $0xb0] sm:$0xff]  }
  0x24   :  { %3562 = vmatpush3.bf16.msra.mxu1 %v3867_v2  ;;  %3542 = vmatpush3.bf16.msra.mxu0 %v3874_v5  ;;  %v3884_v22 = vld [vmem:[#allocation2 + $0xa8] sm:$0xff]   ;;  %v3885_v23 = vld [vmem:[#allocation2 + $0xa0] sm:$0xff]   ;;  %v3886_v24 = vld [vmem:[#allocation2 + $0x98] sm:$0xff]  }
  0x25   :  { %3563 = vmatprep.subr.bf16.mxu1 %v4219_v0  ;;  %3543 = vmatprep.subr.bf16.mxu0 %v4219_v0  ;;  %v3887_v25 = vld [vmem:[#allocation2 + $0x90] sm:$0xff]   ;;  %v3888_v26 = vld [vmem:[#allocation2 + $0x88] sm:$0xff]   ;;  %v3889_v27 = vld [vmem:[#allocation2 + $0x80] sm:$0xff]  }
  0x26   :  { %v66_v28 = vld [vmem:[%s4807_s1] sm:$0xff]  ;;  %v67_v29 = vld [vmem:[%s4807_s1 + $0x8] sm:$0xff]  ;;  %v68_v32 = vld [vmem:[%s4807_s1 + $0x10] sm:$0xff] }
  0x27   :  { %v325_v30 = vpack.c.bf16 %v67_v29, %v66_v28  ;;  %v3890_v31 = vld [vmem:[%s4808_s2] sm:$0xff]   ;;  %v69_v33 = vld [vmem:[%s4807_s1 + $0x18] sm:$0xff]  ;;  %v3901_v36 = vld [vmem:[%s4813_s7 + $0x70] sm:$0xff]  }
  0x28   :  { %3564 = vmatpush3.bf16.msra.mxu1 %v3868_v3  ;;  %3544 = vmatpush3.bf16.msra.mxu0 %v3876_v7  ;;  %v326_v34 = vpack.c.bf16 %v69_v33, %v68_v32  ;;  %v3900_v35 = vld [vmem:[%s4813_s7 + $0x78] sm:$0xff]   ;;  %v3902_v37 = vld [vmem:[%s4813_s7 + $0x68] sm:$0xff]   ;;  %v3903_v38 = vld [vmem:[%s4813_s7 + $0x60] sm:$0xff]  }
  0x29   :  { %3565 = vmatprep.subr.bf16.mxu1 %v4219_v0  ;;  %3545 = vmatprep.subr.bf16.mxu0 %v4219_v0  ;;  %v3891_v45 = vld [vmem:[%s4808_s2 + $0x8] sm:$0xff]   ;;  %v3892_v46 = vld [vmem:[%s4813_s7 + $0x38] sm:$0xff]   ;;  %v3893_v49 = vld [vmem:[%s4813_s7 + $0x30] sm:$0xff]  }
  0x2a   :  { %v3894_v52 = vld [vmem:[%s4813_s7 + $0x28] sm:$0xff]   ;;  %v3895_v54 = vld [vmem:[%s4813_s7 + $0x20] sm:$0xff]   ;;  %v3896_v57 = vld [vmem:[%s4813_s7 + $0x18] sm:$0xff]  }
  0x2b   :  { %v101_v56 = vld [vmem:[%s4814_s8] sm:$0x7]  ;;  %v3897_v59 = vld [vmem:[%s4813_s7 + $0x10] sm:$0xff]   ;;  %v3898_v62 = vld [vmem:[%s4813_s7 + $0x8] sm:$0xff]  }
  0x2c   :  { %3566 = vmatpush3.bf16.msra.mxu1 %v3869_v6  ;;  %3546 = vmatpush3.bf16.msra.mxu0 %v3877_v9  ;;  %v106_v58 = vrot.slane %v101_v56, %v4364_v55  ;;  %v3899_v2 = vld [vmem:[%s4813_s7] sm:$0xff]   ;;  %v3904_v6 = vld [vmem:[%s4813_s7 + $0x58] sm:$0xff]   ;;  %v3905_v7 = vld [vmem:[%s4813_s7 + $0x50] sm:$0xff]  }
  0x2d   :  { %3567 = vmatprep.subr.bf16.mxu1 %v4219_v0  ;;  %3547 = vmatprep.subr.bf16.mxu0 %v4219_v0  ;;  %v3907_v9 = vld [vmem:[%s4813_s7 + $0x40] sm:$0xff]   ;;  %v3914_v56 = vld [vmem:[#allocation2 + $0xd8] sm:$0xff]  }
  0x2e   :  { %v3168_v15 = vld [vmem:[%s4814_s8 + $0x3] sm:$0x7] }
  0x30   :  { %3568 = vmatpush3.bf16.msra.mxu1 %v3870_v8  ;;  %3548 = vmatpush3.bf16.msra.mxu0 %v3878_v11  ;;  %v3906_v8 = vld [vmem:[%s4813_s7 + $0x48] sm:$0xff]   ;;  %v4416_v11 = vld [vmem:[%s4809_s3 + $0x4] sm:$0xf] }
  0x31   :  { %3569 = vmatprep.subr.bf16.mxu1 %v4219_v0  ;;  %3549 = vmatprep.subr.bf16.mxu0 %v4219_v0  ;;  %vm81_vm3 = vcmp.gt.bf16.partialorder %v4416_v11, 0 }
  0x34   :  { %3570 = vmatpush3.bf16.msra.mxu1 %v3871_v10  ;;  %3550 = vmatpush3.bf16.msra.mxu0 %v3879_v13  ;;  %v4411_v10 = vld [vmem:[%s4809_s3] sm:$0xf] }
  0x35   :  { %3571 = vmatprep.subr.bf16.mxu1 %v4219_v0  ;;  %3551 = vmatprep.subr.bf16.mxu0 %v4219_v0  ;;  %vm80_vm2 = vcmp.gt.bf16.partialorder %v4411_v10, 0 }
  0x38   :  { %3572 = vmatpush3.bf16.msra.mxu1 %v3873_v12  ;;  %3552 = vmatpush3.bf16.msra.mxu0 %v3880_v17  ;;  %v4420_v12 = vcombine.low %v4411_v10, %v4416_v11 }
  0x39   :  { %3573 = vmatprep.subr.bf16.mxu1 %v4219_v0  ;;  %3553 = vmatprep.subr.bf16.mxu0 %v4219_v0 }
  0x3c   :  { %3574 = vmatpush3.bf16.msra.mxu1 %v3875_v14  ;;  %3554 = vmatpush3.bf16.msra.mxu0 %v3881_v19  ;;  %v496_v19 = vrot.slane %v3168_v15, %v4364_v55 }
  0x3d   :  { %3579 = vmatprep.subr.bf16.mxu0 %v3882_v20 }
  0x3f   :  { %3576 = vmatmul.mubr.bf16.vlgmr.msra.gmra.mxu1 %v100_v18  ;;  %3556 = vmatmul.mubr.bf16.vlgmr.msra.gmra.mxu0 %v100_v18 }
  0x40   :  { %3580 = vmatpush3.bf16.msra.mxu0 %v3882_v20  ;;  %3595 = vmatprep.mubr.bf16.mxu0 %v325_v30 }
  0x41   :  { %3581 = vmatprep.subr.bf16.mxu0 %v3883_v21  ;;  %3601 = vmatprep.mubr.msk.bf16.mxu1 %vm434_vm1, %v3890_v31 }
  0x44   :  { %3582 = vmatpush3.bf16.msra.mxu0 %v3883_v21 }
  0x45   :  { %3583 = vmatprep.subr.bf16.mxu0 %v3884_v22 }
  0x48   :  { %3584 = vmatpush3.bf16.msra.mxu0 %v3884_v22 }
  0x49   :  { %3585 = vmatprep.subr.bf16.mxu0 %v3885_v23 }
  0x4c   :  { %3586 = vmatpush3.bf16.msra.mxu0 %v3885_v23 }
  0x4d   :  { %3587 = vmatprep.subr.bf16.mxu0 %v3886_v24 }
  0x50   :  { %3588 = vmatpush3.bf16.msra.mxu0 %v3886_v24 }
  0x51   :  { %3589 = vmatprep.subr.bf16.mxu0 %v3887_v25 }
  0x54   :  { %3590 = vmatpush3.bf16.msra.mxu0 %v3887_v25 }
  0x55   :  { %3591 = vmatprep.subr.bf16.mxu0 %v3888_v26 }
  0x58   :  { %3592 = vmatpush3.bf16.msra.mxu0 %v3888_v26 }
  0x59   :  { %3593 = vmatprep.subr.bf16.mxu0 %v3889_v27 }
  0x5c   :  { %3594 = vmatpush3.bf16.msra.mxu0 %v3889_v27 }
  0x5d   :  { %3625 = vmatprep.subr.bf16.mxu0 %v3900_v35 }
  0x5f   :  { %3596 = vmatmul.mubr.bf16.vlgmr.msra.gmra.mxu0 %v326_v34 }
  0x60   :  { %3626 = vmatpush3.bf16.msra.mxu0 %v3900_v35 }
  0x61   :  { %3627 = vmatprep.subr.bf16.mxu0 %v3901_v36 }
  0x64   :  { %3628 = vmatpush3.bf16.msra.mxu0 %v3901_v36 }
  0x65   :  { %3629 = vmatprep.subr.bf16.mxu0 %v3902_v37 }
  0x68   :  { %3630 = vmatpush3.bf16.msra.mxu0 %v3902_v37 }
  0x69   :  { %3631 = vmatprep.subr.bf16.mxu0 %v3903_v38 }
  0x6c   :  { %3632 = vmatpush3.bf16.msra.mxu0 %v3903_v38 }
  0x6d   :  { %3633 = vmatprep.subr.bf16.mxu0 %v3904_v6 }
  0x70   :  { %3634 = vmatpush3.bf16.msra.mxu0 %v3904_v6 }
  0x71   :  { %3635 = vmatprep.subr.bf16.mxu0 %v3905_v7 }
  0x74   :  { %3636 = vmatpush3.bf16.msra.mxu0 %v3905_v7 }
  0x75   :  { %3637 = vmatprep.subr.bf16.mxu0 %v3906_v8 }
  0x78   :  { %3638 = vmatpush3.bf16.msra.mxu0 %v3906_v8 }
  0x79   :  { %3639 = vmatprep.subr.bf16.mxu0 %v3907_v9 }
  0x7c   :  { %3640 = vmatpush3.bf16.msra.mxu0 %v3907_v9 }
  0x7d   :  { %3671 = vmatprep.subr.bf16.mxu0 %v4219_v0 }
  0xff   :  { %v300_v39 = vpop.f32.mrf.mxu1  ;;  %v190_v44 = vpop.f32.mrf.mxu0 }
 0x100   :  { %v191_v60 = vadd.f32 %v190_v44, %v106_v58  ;;  %v4433_v44 = vld [vmem:[%s4809_s3 + $0x8] sm:$0xf] }
 0x101   :  { %v3577_v40 = vpop.f32.mrf.mxu1  ;;  %v3557_v47 = vpop.f32.mrf.mxu0  ;;  %vm82_vm4 = vcmp.gt.bf16.partialorder %v4433_v44, 0 }
 0x102   :  { %v197_v63 = vmul.f32 0.01, %v191_v60  ;;  %v3910_v47 = vld [vmem:[#allocation2 + $0xf8] sm:$0xff]  }
 0x103   :  { %v303_v41 = vpop.f32.mrf.mxu1  ;;  %v193_v48 = vpop.f32.mrf.mxu0 }
 0x104   :  { %v307_v42 = vpack.c.bf16 %v303_v41, %v300_v39  ;;  %v194_v61 = vadd.f32 %v193_v48, %v106_v58  ;;  %v4385_v3 = vmax.f32 %v191_v60, %v197_v63  ;;  %v3916_v58 = vld [vmem:[#allocation2 + $0xc8] sm:$0xff]   ;;  %v4221_v60 = vmov 0  }
 0x105   :  { %v3578_v43 = vpop.f32.mrf.mxu1  ;;  %v3558_v50 = vpop.f32.mrf.mxu0  ;;  %3860 = vset.pattern.permute.xlu0 %v4221_v60  ;;  %3861 = vset.pattern.permute.xlu1 %v4221_v60 }
 0x106   :  { %3599 = vmatprep.subr.bf16.mxu1 %v307_v42  ;;  %v198_v1 = vmul.f32 0.01, %v194_v61  ;;  %v3911_v50 = vld [vmem:[#allocation2 + $0xf0] sm:$0xff]  }
 0x107   :  { %3600 = vmatpush3.bf16.msra.mxu1 %v307_v42 }
 0x108   :  { %3605 = vmatprep.subr.bf16.mxu1 %v4219_v0  ;;  %v4387_v4 = vmax.f32 %v194_v61, %v198_v1  ;;  %v3205_v1 = vld [vmem:[%s4814_s8 + $0x12] sm:$0x7] }
 0x109   :  { %v804_v7 = vrot.slane %v3205_v1, %v4364_v55 }
 0x10a   :  { %3602 = vmatmul.mubr.msk.bf16.vlgmr.msra.gmra.mxu1 %vm434_vm1, %v3891_v45  ;;  %v4392_v5 = vpack.c.bf16 %v4387_v4, %v4385_v3  ;;  %v4438_v45 = vld [vmem:[%s4809_s3 + $0xc] sm:$0xf] }
 0x10b   :  { %3606 = vmatpush3.bf16.msra.mxu1 %v3892_v46  ;;  %3621 = vmatprep.mubr.msk.bf16.mxu1 %vm4220_vm0, %v4219_v0  ;;  %vm83_vm5 = vcmp.gt.bf16.partialorder %v4438_v45, 0 }
 0x10c   :  { %3607 = vmatprep.subr.bf16.mxu1 %v4219_v0 }
 0x10f   :  { %3608 = vmatpush3.bf16.msra.mxu1 %v3893_v49  ;;  %v4442_v49 = vcombine.low %v4433_v44, %v4438_v45 }
 0x110   :  { %3609 = vmatprep.subr.bf16.mxu1 %v4219_v0 }
 0x113   :  { %3610 = vmatpush3.bf16.msra.mxu1 %v3894_v52  ;;  %v3912_v52 = vld [vmem:[#allocation2 + $0xe8] sm:$0xff]  }
 0x114   :  { %3611 = vmatprep.subr.bf16.mxu1 %v4219_v0 }
 0x117   :  { %3612 = vmatpush3.bf16.msra.mxu1 %v3895_v54  ;;  %v3913_v54 = vld [vmem:[#allocation2 + $0xe0] sm:$0xff]  }
 0x118   :  { %3613 = vmatprep.subr.bf16.mxu1 %v4219_v0 }
 0x11b   :  { %3614 = vmatpush3.bf16.msra.mxu1 %v3896_v57  ;;  %v3915_v57 = vld [vmem:[#allocation2 + $0xd0] sm:$0xff]  }
 0x11c   :  { %3615 = vmatprep.subr.bf16.mxu1 %v4219_v0 }
 0x11f   :  { %3616 = vmatpush3.bf16.msra.mxu1 %v3897_v59  ;;  %v3597_v13 = vpop.f32.mrf.mxu0  ;;  %v3917_v59 = vld [vmem:[#allocation2 + $0xc0] sm:$0xff]  }
 0x120   :  { %3617 = vmatprep.subr.bf16.mxu1 %v4219_v0 }
 0x121   :  { %v409_v14 = vpop.f32.mrf.mxu0 }
 0x123   :  { %3618 = vmatpush3.bf16.msra.mxu1 %v3898_v62  ;;  %v3598_v17 = vpop.f32.mrf.mxu0 }
 0x124   :  { %3619 = vmatprep.subr.bf16.mxu1 %v4219_v0 }
 0x125   :  { %v412_v23 = vpop.f32.mrf.mxu0 }
 0x127   :  { %3620 = vmatpush3.bf16.msra.mxu1 %v3899_v2 }
 0x12a   :  { %3622 = vmatmul.mubr.bf16.vlgmr.msra.gmra.mxu1 %v4392_v5 }
 0x12b   :  { %3647 = vmatprep.mubr.msk.bf16.mxu1 %vm434_vm1, %v4420_v12 }
 0x1ca   :  { %v3603_v16 = vpop.f32.mrf.mxu1 }
 0x1cb   :  { %v484_v18 = vadd.f32 %v3603_v16, %v3597_v13 }
 0x1cc   :  { %v475_v20 = vpop.f32.mrf.mxu1 }
 0x1cd   :  { %v476_v21 = vadd.f32 %v475_v20, %v409_v14  ;;  %v500_v26 = vadd.f32 %v496_v19, %v484_v18 }
 0x1ce   :  { %v3604_v22 = vpop.f32.mrf.mxu1 }
 0x1cf   :  { %v498_v24 = vadd.f32 %v496_v19, %v476_v21  ;;  %v487_v25 = vadd.f32 %v3604_v22, %v3598_v17  ;;  %v504_v33 = vmul.f32 0.01, %v500_v26 }
 0x1d0   :  { %v478_v27 = vpop.f32.mrf.mxu1 }
 0x1d1   :  { %v501_v28 = vadd.f32 %v496_v19, %v487_v25  ;;  %v479_v29 = vadd.f32 %v478_v27, %v412_v23  ;;  %v502_v30 = vmul.f32 0.01, %v498_v24  ;;  %v508_v38 = vmax.f32 %v500_v26, %v504_v33 }
 0x1d3   :  { %v505_v31 = vmul.f32 0.01, %v501_v28  ;;  %v499_v32 = vadd.f32 %v496_v19, %v479_v29  ;;  %v506_v36 = vmax.f32 %v498_v24, %v502_v30 }
 0x1d5   :  { %v503_v34 = vmul.f32 0.01, %v499_v32  ;;  %v509_v35 = vmax.f32 %v501_v28, %v505_v31 }
 0x1d7   :  { %v507_v37 = vmax.f32 %v499_v32, %v503_v34  ;;  %v635_v40 = vpack.c.bf16 %v509_v35, %v508_v38  ;;  %v4222_v32 = vmov 839922192   ;;  %v4223_v34 = vmov 1985246804  }
 0x1d8   :  { %v953_v33 = vunpack.c.l.s4 %v4222_v32  ;;  %v960_v35 = vunpack.c.l.s4 %v4223_v34 }
 0x1d9   :  { %v634_v39 = vpack.c.bf16 %v507_v37, %v506_v36 }
 0x1da   :  { %v954_v36 = vunpack.c.0.s8 %v953_v33  ;;  %v961_v37 = vunpack.c.0.s8 %v960_v35 }
 0x1db   :  { %3641 = vmatprep.mubr.bf16.mxu0 %v634_v39 }
 0x1dc   :  { %3642 = vmatmul.mubr.bf16.vlgmr.msra.gmra.mxu0 %v635_v40  ;;  %v4462_v38 = vsub.s32 %v954_v36, %v4357_v53 }
 0x1dd   :  { %3675 = vmatprep.mubr.msk.bf16.mxu0 %vm4220_vm0, %v4219_v0 }
 0x1ea   :  { %v609_v41 = vpop.f32.mrf.mxu1 }
 0x1ec   :  { %v3623_v42 = vpop.f32.mrf.mxu1 }
 0x1ee   :  { %v612_v43 = vpop.f32.mrf.mxu1 }
 0x1ef   :  { %v616_v46 = vpack.c.bf16 %v612_v43, %v609_v41 }
 0x1f0   :  { %v3624_v48 = vpop.f32.mrf.mxu1 }
 0x1f1   :  { %3645 = vmatprep.subr.bf16.mxu1 %v616_v46 }
 0x1f2   :  { %3646 = vmatpush3.bf16.msra.mxu1 %v616_v46 }
 0x1f3   :  { %3651 = vmatprep.subr.bf16.mxu1 %v3910_v47 }
 0x1f5   :  { %3648 = vmatmul.mubr.msk.bf16.vlgmr.msra.gmra.mxu1 %vm434_vm1, %v4442_v49 }
 0x1f6   :  { %3652 = vmatpush3.bf16.msra.mxu1 %v3910_v47  ;;  %3667 = vmatprep.mubr.bf16.mxu1 %v634_v39  ;;  %v4465_v39 = vsub.s32 %v961_v37, %v4357_v53 }
 0x1f7   :  { %3653 = vmatprep.subr.bf16.mxu1 %v3911_v50 }
 0x1fa   :  { %3654 = vmatpush3.bf16.msra.mxu1 %v3911_v50 }
 0x1fb   :  { %3655 = vmatprep.subr.bf16.mxu1 %v3912_v52 }
 0x1fe   :  { %3656 = vmatpush3.bf16.msra.mxu1 %v3912_v52 }
 0x1ff   :  { %3657 = vmatprep.subr.bf16.mxu1 %v3913_v54 }
 0x202   :  { %3658 = vmatpush3.bf16.msra.mxu1 %v3913_v54 }
 0x203   :  { %3659 = vmatprep.subr.bf16.mxu1 %v3914_v56 }
 0x206   :  { %3660 = vmatpush3.bf16.msra.mxu1 %v3914_v56 }
 0x207   :  { %3661 = vmatprep.subr.bf16.mxu1 %v3915_v57 }
 0x20a   :  { %3662 = vmatpush3.bf16.msra.mxu1 %v3915_v57 }
 0x20b   :  { %3663 = vmatprep.subr.bf16.mxu1 %v3916_v58 }
 0x20e   :  { %3664 = vmatpush3.bf16.msra.mxu1 %v3916_v58 }
 0x20f   :  { %3665 = vmatprep.subr.bf16.mxu1 %v3917_v59 }
 0x212   :  { %3666 = vmatpush3.bf16.msra.mxu1 %v3917_v59 }
 0x213   :  { %3679 = vmatprep.subr.bf16.mxu1 %v4219_v0 }
 0x215   :  { %3668 = vmatmul.mubr.bf16.vlgmr.msra.gmra.mxu1 %v635_v40 }
 0x216   :  { %3695 = vmatprep.mubr.msk.bf16.mxu1 %vm4220_vm0, %v4219_v0 }
 0x29c   :  { %v3643_v61 = vpop.f32.mrf.mxu0 }
 0x29e   :  { %v718_v62 = vpop.f32.mrf.mxu0 }
 0x2a0   :  { %v3644_v2 = vpop.f32.mrf.mxu0 }
 0x2a2   :  { %v721_v16 = vpop.f32.mrf.mxu0 }
 0x2b5   :  { %v3649_v63 = vpop.f32.mrf.mxu1 }
 0x2b6   :  { %v792_v13 = vadd.f32 %v3649_v63, %v3643_v61 }
 0x2b7   :  { %v783_v6 = vpop.f32.mrf.mxu1 }
 0x2b8   :  { %v784_v8 = vadd.f32 %v783_v6, %v718_v62  ;;  %v808_v20 = vadd.f32 %v804_v7, %v792_v13 }
 0x2b9   :  { %v3650_v9 = vpop.f32.mrf.mxu1 }
 0x2ba   :  { %v806_v14 = vadd.f32 %v804_v7, %v784_v8  ;;  %v795_v15 = vadd.f32 %v3650_v9, %v3644_v2  ;;  %v812_v25 = vmul.f32 0.01, %v808_v20 }
 0x2bb   :  { %v786_v17 = vpop.f32.mrf.mxu1 }
 0x2bc   :  { %v809_v18 = vadd.f32 %v804_v7, %v795_v15  ;;  %v787_v19 = vadd.f32 %v786_v17, %v721_v16  ;;  %v810_v21 = vmul.f32 0.01, %v806_v14  ;;  %v816_v30 = vmax.f32 %v808_v20, %v812_v25 }
 0x2be   :  { %v807_v22 = vadd.f32 %v804_v7, %v787_v19  ;;  %v813_v23 = vmul.f32 0.01, %v809_v18  ;;  %v4455_v26 = vmax.f32 %v806_v14, %v810_v21 }
 0x2c0   :  { %v811_v24 = vmul.f32 0.01, %v807_v22  ;;  %v817_v28 = vmax.f32 %v809_v18, %v813_v23 }
 0x2c2   :  { %v4457_v27 = vmax.f32 %v807_v22, %v811_v24  ;;  %v941_v31 = vpack.c.bf16 %v817_v28, %v816_v30 }
 0x2c4   :  { %v940_v29 = vpack.c.bf16 %v4457_v27, %v4455_v26 }
 0x2c6   :  { %944 = vperm.xlu0 %3860, %v940_v29  }
 0x2ca   :  { %948 = vperm.xlu0 %3860, %v941_v31  }
 0x341   :  { %v945_v40 = vpop.permute.xlu0 %944 }
 0x342   :  { %v958_v41 = vrot.slane %v945_v40, %v4462_v38  ;;  %v965_v42 = vrot.slane %v945_v40, %v4465_v39 }
 0x344   :  { %v984_v43 = vsel %vm80_vm2, %v958_v41, 4048220490  ;;  %v985_v46 = vsel %vm81_vm3, %v965_v42, 4048220490 }
 0x345   :  { %v949_v47 = vpop.permute.xlu0 %948  ;;  %v3215_v52 = vcombine.low %v984_v43, %v985_v46 }
 0x346   :  { %v972_v48 = vrot.slane %v949_v47, %v4462_v38  ;;  %v979_v50 = vrot.slane %v949_v47, %v4465_v39 }
 0x347   :  { %v1000_v58 = vsel %vm434_vm1, %v3215_v52, 4286644096 }
 0x348   :  { %v986_v54 = vsel %vm82_vm4, %v972_v48, 4048220490  ;;  %v987_v56 = vsel %vm83_vm5, %v979_v50, 4048220490  ;;  %v3669_v48 = vpop.f32.mrf.mxu1  ;;  %v3206_v50 = vld [vmem:[%s4814_s8 + $0x6] sm:$0x7] }
 0x349   :  { %v3216_v57 = vcombine.low %v986_v54, %v987_v56  ;;  %v4502_v54 = vand.u32 127, %v103_v51 }
 0x34b   :  { %v1003_v59 = vsel %vm434_vm1, %v3216_v57, 4286644096  ;;  %vm1086_vm6 = vcmp.eq.s32.totalorder %v4502_v54, 127  ;;  %v4043_v54 = vld [vmem:[#allocation5 + $0x2d0] ss:$12 sps:$4 sm:$0xff]  }
 0x34c   :  { %v1005_v61 = vmax.bf16 %v1003_v59, %v1000_v58 }
 0x34e   :  { %v1006_v62 = vunpack.i.l.bf16 %v1005_v61  ;;  %v1007_v63 = vunpack.i.h.bf16 %v1005_v61 }
 0x350   :  { %v1008_v1 = vmax.f32 %v1006_v62, %v1007_v63 }
 0x352   :  { %v1009_v2 = vrot.slane %v1008_v1, 4 }
 0x354   :  { %v1010_v6 = vmax.f32 %v1008_v1, %v1009_v2 }
 0x356   :  { %v1011_v7 = vrot.slane %v1010_v6, 2 }
 0x358   :  { %v1012_v8 = vmax.f32 %v1010_v6, %v1011_v7 }
 0x35a   :  { %v1013_v9 = vrot.slane %v1012_v8, 1 }
 0x35c   :  { %v1014_v13 = vmax.f32 %v1012_v8, %v1013_v9 }
 0x35e   :  { %v1015_v14 = vpack.i.bf16 %v1014_v13, %v1014_v13 }
 0x360   :  { %v3217_v15 = vcombine.low %v1015_v14, %v1015_v14 }
 0x362   :  { %v1022_v16 = vsel %vm82_vm4, %v3217_v15, 4048220490  ;;  %v1023_v17 = vsel %vm83_vm5, %v3217_v15, 4048220490  ;;  %v1020_v20 = vsel %vm80_vm2, %v3217_v15, 4048220490 }
 0x363   :  { %v3219_v18 = vcombine.low %v1022_v16, %v1023_v17  ;;  %v1021_v21 = vsel %vm81_vm3, %v3217_v15, 4048220490 }
 0x364   :  { %v3218_v22 = vcombine.low %v1020_v20, %v1021_v21  ;;  %v3919_v20 = vld [vmem:[#allocation5 + $0xa8] ss:$12 sps:$4 sm:$0xff]   ;;  %v3921_v21 = vld [vmem:[#allocation5 + $0xac] ss:$12 sps:$4 sm:$0xff]  }
 0x365   :  { %v1040_v19 = vsel %vm434_vm1, %v3219_v18, 4286644096  ;;  %v4517_v18 = vld [vmem:[%s4810_s4] sm:$0xff]  }
 0x366   :  { %1042 = vmax.xlane.bf16.xlu1 %v1040_v19  ;;  %v1035_v23 = vsel %vm434_vm1, %v3218_v22, 4286644096  ;;  %v4224_v19 = vmov 127   ;;  %v3922_v22 = vld [vmem:[#allocation5 + $0xb0] ss:$12 sps:$4 sm:$0xff]  }
 0x367   :  { %3680 = vmatpush3.bf16.msra.mxu1 %v3922_v22 }
 0x368   :  { %3681 = vmatprep.subr.bf16.mxu1 %v4219_v0 }
 0x36e   :  { %1037 = vmax.xlane.bf16.xlu1 %v1035_v23 }
 0x3f3   :  { %v1043_v24 = vpop.xlane.xlu1 %1042 }
 0x3f4   :  { %v1046_v25 = vunpack.c.l.bf16 %v1043_v24  ;;  %v1047_v29 = vunpack.c.h.bf16 %v1043_v24 }
 0x3f6   :  { %v1050_v31 = vsub.f32 %v816_v30, %v1046_v25  ;;  %v1051_v32 = vsub.f32 %v817_v28, %v1047_v29 }
 0x3f8   :  { %v1056_v33 = vmul.f32 1.442695, %v1050_v31  ;;  %v1058_v34 = vmul.f32 1.442695, %v1051_v32  ;;  %v3925_v31 = vld [vmem:[#allocation5 + $0x94] ss:$12 sps:$4 sm:$0xff]  }
 0x3f9   :  { %v3923_v32 = vld [vmem:[#allocation5 + $0x90] ss:$12 sps:$4 sm:$0xff]  }
 0x3fa   :  { %4071 = vpow2.f32 %v1056_v33  ;;  %v3926_v33 = vld [vmem:[#allocation5 + $0x98] ss:$12 sps:$4 sm:$0xff]  }
 0x3fb   :  { %v1038_v35 = vpop.xlane.xlu1 %1037  ;;  %4073 = vpow2.f32 %v1058_v34  ;;  %3682 = vmatpush3.bf16.msra.mxu1 %v3926_v33  ;;  %v3961_v33 = vld [vmem:[#allocation5 + $0x13c] ss:$12 sps:$4 sm:$0xff]  }
 0x3fc   :  { %v1044_v36 = vunpack.c.l.bf16 %v1038_v35  ;;  %v1045_v37 = vunpack.c.h.bf16 %v1038_v35  ;;  %v3929_v35 = vld [vmem:[#allocation5 + $0x7c] ss:$12 sps:$4 sm:$0xff]   ;;  %3683 = vmatprep.subr.bf16.mxu1 %v4219_v0 }
 0x3fe   :  { %v1048_v40 = vsub.f32 %v4455_v26, %v1044_v36  ;;  %v1049_v41 = vsub.f32 %v4457_v27, %v1045_v37  ;;  %v925_v26 = vpop.f32.mrf.mxu1  ;;  %v841_v27 = vrot.slane %v3206_v50, %v4364_v55  ;;  %v3927_v37 = vld [vmem:[#allocation5 + $0x78] ss:$12 sps:$4 sm:$0xff]   ;;  %v3941_v50 = vld [vmem:[#allocation5 + $0x34] ss:$12 sps:$4 sm:$0xff]  }
 0x400   :  { %v1052_v42 = vmul.f32 1.442695, %v1048_v40  ;;  %v1054_v43 = vmul.f32 1.442695, %v1049_v41  ;;  %v3670_v52 = vpop.f32.mrf.mxu1  ;;  %v934_v57 = vadd.f32 %v3669_v48, %v841_v27  ;;  %v926_v1 = vadd.f32 %v925_v26, %v841_v27  ;;  %v3930_v40 = vld [vmem:[#allocation5 + $0x80] ss:$12 sps:$4 sm:$0xff]  }
 0x401   :  { %v937_v58 = vadd.f32 %v3670_v52, %v841_v27  ;;  %3684 = vmatpush3.bf16.msra.mxu1 %v3930_v40  ;;  %v3938_v48 = vld [vmem:[#allocation5 + $0x50] ss:$12 sps:$4 sm:$0xff]   ;;  %v3966_v40 = vld [vmem:[#allocation5 + $0x128] ss:$12 sps:$4 sm:$0xff]  }
 0x402   :  { %4075 = vpow2.f32 %v1052_v42  ;;  %v928_v62 = vpop.f32.mrf.mxu1  ;;  %v3933_v42 = vld [vmem:[#allocation5 + $0x64] ss:$12 sps:$4 sm:$0xff]   ;;  %3685 = vmatprep.subr.bf16.mxu1 %v4219_v0  ;;  %v3945_v52 = vld [vmem:[#allocation5 + $0x1c] ss:$12 sps:$4 sm:$0xff]  }
 0x403   :  { %4077 = vpow2.f32 %v1054_v43  ;;  %v929_v7 = vadd.f32 %v928_v62, %v841_v27  ;;  %v3939_v26 = vld [vmem:[#allocation5 + $0x30] ss:$12 sps:$4 sm:$0xff]   ;;  %v3942_v27 = vld [vmem:[#allocation5 + $0x38] ss:$12 sps:$4 sm:$0xff]  }
 0x404   :  { %v3953_v62 = vld [vmem:[#allocation5 + $0x16c] ss:$12 sps:$4 sm:$0xff]  }
 0x407   :  { %v4072_v46 = vpop.eup %4071 }
 0x408   :  { %1072 = vperm.xlu0 %3860, %v4072_v46   ;;  %v4074_v47 = vpop.eup %4073  ;;  %v3931_v46 = vld [vmem:[#allocation5 + $0x60] ss:$12 sps:$4 sm:$0xff]  }
 0x40c   :  { %1077 = vperm.xlu0 %3860, %v4074_v47   ;;  %v3934_v47 = vld [vmem:[#allocation5 + $0x68] ss:$12 sps:$4 sm:$0xff]  }
 0x40d   :  { %3686 = vmatpush3.bf16.msra.mxu1 %v3934_v47  ;;  %v3971_v47 = vld [vmem:[#allocation5 + $0xf0] ss:$12 sps:$4 sm:$0xff]  }
 0x40e   :  { %3687 = vmatprep.subr.bf16.mxu1 %v4219_v0 }
 0x40f   :  { %v4076_v28 = vpop.eup %4075 }
 0x410   :  { %v4078_v30 = vpop.eup %4077  ;;  %1062 = vperm.xlu1 %3861, %v4076_v28   ;;  %v3937_v28 = vld [vmem:[#allocation5 + $0x4c] ss:$12 sps:$4 sm:$0xff]  }
 0x411   :  { %1067 = vperm.xlu0 %3860, %v4078_v30   ;;  %v3935_v30 = vld [vmem:[#allocation5 + $0x48] ss:$12 sps:$4 sm:$0xff]   ;;  %3688 = vmatpush3.bf16.msra.mxu1 %v3938_v48  ;;  %v3975_v48 = vld [vmem:[#allocation5 + $0xd8] ss:$12 sps:$4 sm:$0xff]  }
 0x412   :  { %3689 = vmatprep.subr.bf16.mxu1 %v4219_v0 }
 0x415   :  { %3862 = vset.pattern.permute.xlu0 %v4224_v19  ;;  %3690 = vmatpush3.bf16.msra.mxu1 %v3942_v27  ;;  %v3979_v27 = vld [vmem:[#allocation5 + $0xc0] ss:$12 sps:$4 sm:$0xff]  }
 0x416   :  { %3691 = vmatprep.subr.bf16.mxu1 %v4219_v0 }
 0x483   :  { %v1073_v56 = vpop.permute.xlu0 %1072 }
 0x484   :  { %v1082_v59 = vmul.f32 %v1073_v56, %v934_v57  ;;  %v3946_v57 = vld [vmem:[#allocation5 + $0x20] ss:$12 sps:$4 sm:$0xff]  }
 0x485   :  { %3692 = vmatpush3.bf16.msra.mxu1 %v3946_v57  ;;  %v3984_v57 = vld [vmem:[%s4813_s7 + $0xb8] sm:$0xff]  }
 0x486   :  { %v1091_v2 = vsel %vm1086_vm6, %v1073_v56, %v1082_v59  ;;  %v3943_v56 = vld [vmem:[#allocation5 + $0x18] ss:$12 sps:$4 sm:$0xff]   ;;  %3693 = vmatprep.subr.bf16.mxu1 %v4219_v0  ;;  %v3947_v59 = vld [vmem:[#allocation5] ss:$12 sps:$4 sm:$0xff]  }
 0x487   :  { %v1078_v61 = vpop.permute.xlu0 %1077 }
 0x488   :  { %v1083_v63 = vmul.f32 %v1078_v61, %v937_v58  ;;  %v3949_v58 = vld [vmem:[#allocation5 + $0x4] ss:$12 sps:$4 sm:$0xff]  }
 0x48a   :  { %v1092_v6 = vsel %vm1086_vm6, %v1078_v61, %v1083_v63  ;;  %v3950_v61 = vld [vmem:[#allocation5 + $0x8] ss:$12 sps:$4 sm:$0xff]  }
 0x48b   :  { %v1094_v8 = vpack.c.bf16 %v1092_v6, %v1091_v2  ;;  %v1063_v51 = vpop.permute.xlu1 %1062  ;;  %3694 = vmatpush3.bf16.msra.mxu1 %v3950_v61  ;;  %v3988_v61 = vld [vmem:[%s4813_s7 + $0xa8] sm:$0xff]  }
 0x48c   :  { %v1068_v9 = vpop.permute.xlu0 %1067  ;;  %v1080_v13 = vmul.f32 %v1063_v51, %v926_v1  ;;  %3699 = vmatprep.subr.bf16.mxu1 %v4219_v0 }
 0x48d   :  { %v1081_v14 = vmul.f32 %v1068_v9, %v929_v7  ;;  %3672 = vmatpush3.bf16.msra.mxu0 %v1094_v8 }
 0x48e   :  { %v1089_v15 = vsel %vm1086_vm6, %v1063_v51, %v1080_v13  ;;  %3673 = vmatprep.subr.bf16.mxu0 %v4219_v0 }
 0x48f   :  { %v1090_v16 = vsel %vm1086_vm6, %v1068_v9, %v1081_v14 }
 0x490   :  { %v1093_v17 = vpack.c.bf16 %v1090_v16, %v1089_v15 }
 0x492   :  { %3674 = vmatpush3.bf16.msra.mxu0 %v1093_v17 }
 0x493   :  { %1358 = vmatprep.subr.bf16.mxu0 %v3921_v21 }
 0x495   :  { %3676 = vmatmul.mubr.msk.bf16.vlgmr.msra.gmra.mxu0 %vm1100_vm7, %v4517_v18 }
 0x496   :  { %1390 = vmatprep.mubr.bf16.mxu0 %v4221_v60  ;;  %1359 = vmatpush1.bf16.msra.mxu0 %v3919_v20 }
 0x497   :  { %1360 = vmatprep.subr.bf16.mxu0 %v3925_v31  ;;  %v3957_v31 = vld [vmem:[#allocation5 + $0x154] ss:$12 sps:$4 sm:$0xff]  }
 0x49a   :  { %1361 = vmatpush1.bf16.msra.mxu0 %v3923_v32  ;;  %v3958_v32 = vld [vmem:[#allocation5 + $0x158] ss:$12 sps:$4 sm:$0xff]  }
 0x49b   :  { %1362 = vmatprep.subr.bf16.mxu0 %v3929_v35  ;;  %v3962_v35 = vld [vmem:[#allocation5 + $0x140] ss:$12 sps:$4 sm:$0xff]  }
 0x49e   :  { %1363 = vmatpush1.bf16.msra.mxu0 %v3927_v37  ;;  %v3963_v37 = vld [vmem:[#allocation5 + $0x120] ss:$12 sps:$4 sm:$0xff]  }
 0x49f   :  { %1364 = vmatprep.subr.bf16.mxu0 %v3933_v42  ;;  %v3967_v42 = vld [vmem:[#allocation5 + $0x108] ss:$12 sps:$4 sm:$0xff]  }
 0x4a2   :  { %1365 = vmatpush1.bf16.msra.mxu0 %v3931_v46  ;;  %v3973_v46 = vld [vmem:[#allocation5 + $0xf4] ss:$12 sps:$4 sm:$0xff]  }
 0x4a3   :  { %1366 = vmatprep.subr.bf16.mxu0 %v3937_v28  ;;  %v3974_v28 = vld [vmem:[#allocation5 + $0xf8] ss:$12 sps:$4 sm:$0xff]  }
 0x4a6   :  { %1367 = vmatpush1.bf16.msra.mxu0 %v3935_v30  ;;  %v3977_v30 = vld [vmem:[#allocation5 + $0xdc] ss:$12 sps:$4 sm:$0xff]  }
 0x4a7   :  { %1368 = vmatprep.subr.bf16.mxu0 %v3941_v50  ;;  %v3978_v50 = vld [vmem:[#allocation5 + $0xe0] ss:$12 sps:$4 sm:$0xff]  }
 0x4aa   :  { %1369 = vmatpush1.bf16.msra.mxu0 %v3939_v26  ;;  %v3981_v26 = vld [vmem:[#allocation5 + $0xc4] ss:$12 sps:$4 sm:$0xff]  }
 0x4ab   :  { %1370 = vmatprep.subr.bf16.mxu0 %v3945_v52  ;;  %v3982_v52 = vld [vmem:[#allocation5 + $0xc8] ss:$12 sps:$4 sm:$0xff]  }
 0x4ae   :  { %1371 = vmatpush1.bf16.msra.mxu0 %v3943_v56  ;;  %v3983_v56 = vld [vmem:[%s4813_s7 + $0xf8] sm:$0xff]  }
 0x4af   :  { %1372 = vmatprep.subr.bf16.mxu0 %v3949_v58  ;;  %v3986_v58 = vld [vmem:[%s4813_s7 + $0xb0] sm:$0xff]  }
 0x4b2   :  { %1373 = vmatpush1.bf16.msra.mxu0 %v3947_v59  ;;  %v3987_v59 = vld [vmem:[%s4813_s7 + $0xe8] sm:$0xff]  }
 0x4b3   :  { %1621 = vmatprep.subr.bf16.mxu0 %v3953_v62  ;;  %v3989_v62 = vld [vmem:[%s4813_s7 + $0xe0] sm:$0xff]  }
 0x555   :  { %v4524_v23 = vpop.f32.mrf.mxu0 }
 0x556   :  { %4079 = vrcp.f32 %v4524_v23  ;;  %vm1147_vm8 = vcmp.gt.f32.partialorder %v4524_v23, 0.0  ;;  %v1145_v1 = vsel %vm1086_vm6, 0.0, %v4524_v23  ;;  %v3951_v23 = vld [vmem:[#allocation5 + $0x168] ss:$12 sps:$4 sm:$0xff]  }
 0x557   :  { %v3677_v24 = vpop.f32.mrf.mxu0 }
 0x558   :  { %v3954_v24 = vld [vmem:[#allocation5 + $0x170] ss:$12 sps:$4 sm:$0xff]  }
 0x559   :  { %v4527_v25 = vpop.f32.mrf.mxu0 }
 0x55a   :  { %4081 = vrcp.f32 %v4527_v25  ;;  %vm1148_vm9 = vcmp.gt.f32.partialorder %v4527_v25, 0.0  ;;  %v1146_v8 = vsel %vm1086_vm6, 0.0, %v4527_v25  ;;  %v3955_v25 = vld [vmem:[#allocation5 + $0x150] ss:$12 sps:$4 sm:$0xff]  }
 0x55b   :  { %v3678_v29 = vpop.f32.mrf.mxu0 }
 0x563   :  { %v4080_v34 = vpop.eup %4079 }
 0x564   :  { %v1153_v36 = vsel %vm1147_vm8, %v4080_v34, 0.0  ;;  %v3959_v34 = vld [vmem:[#allocation5 + $0x138] ss:$12 sps:$4 sm:$0xff]  }
 0x565   :  { %1157 = vperm.xlu0 %3862, %v1153_v36   ;;  %v3965_v36 = vld [vmem:[#allocation5 + $0x124] ss:$12 sps:$4 sm:$0xff]  }
 0x567   :  { %v4082_v41 = vpop.eup %4081 }
 0x568   :  { %v1154_v43 = vsel %vm1148_vm9, %v4082_v41, 0.0  ;;  %v3969_v41 = vld [vmem:[#allocation5 + $0x10c] ss:$12 sps:$4 sm:$0xff]  }
 0x569   :  { %1162 = vperm.xlu0 %3862, %v1154_v43   ;;  %v3970_v43 = vld [vmem:[#allocation5 + $0x110] ss:$12 sps:$4 sm:$0xff]  }
 0x56d   :  { %3863 = vset.pattern.permute.xlu0 %v4221_v60 }
 0x5e0   :  { %v1158_v63 = vpop.permute.xlu0 %1157 }
 0x5e1   :  { %v1165_v2 = vmul.f32 %v1158_v63, %v1145_v1  ;;  %v3990_v63 = vld [vmem:[%s4813_s7 + $0xa0] sm:$0xff]   ;;  %v3991_v1 = vld [vmem:[%s4813_s7 + $0xd8] sm:$0xff]  }
 0x5e3   :  { %v1169_v6 = vmin.f32 %v1165_v2, 0.0  ;;  %vm1167_vm10 = vcmp.gt.f32.partialorder %v1165_v2, 0.0 }
 0x5e4   :  { %v1163_v7 = vpop.permute.xlu0 %1162 }
 0x5e5   :  { %v1171_v51 = vmul.f32 1.442695, %v1169_v6  ;;  %v1166_v9 = vmul.f32 %v1163_v7, %v1146_v8  ;;  %v3993_v6 = vld [vmem:[%s4813_s7 + $0xd0] sm:$0xff]   ;;  %v3995_v8 = vld [vmem:[%s4813_s7 + $0xc8] sm:$0xff]  }
 0x5e6   :  { %v3994_v7 = vld [vmem:[%s4813_s7 + $0x90] sm:$0xff]  }
 0x5e7   :  { %4083 = vpow2.f32 %v1171_v51  ;;  %v1170_v13 = vmin.f32 %v1166_v9, 0.0  ;;  %vm1168_vm11 = vcmp.gt.f32.partialorder %v1166_v9, 0.0  ;;  %v3996_v51 = vld [vmem:[%s4813_s7 + $0x88] sm:$0xff]  }
 0x5e9   :  { %v1173_v14 = vmul.f32 1.442695, %v1170_v13  ;;  %v3998_v13 = vld [vmem:[%s4813_s7 + $0x80] sm:$0xff]  }
 0x5eb   :  { %4085 = vpow2.f32 %v1173_v14 }
 0x5f4   :  { %v4084_v15 = vpop.eup %4083 }
 0x5f5   :  { %v3222_v16 = vadd.f32 -1.0, %v4084_v15 }
 0x5f7   :  { %v1177_v21 = vsel %vm1167_vm10, %v1165_v2, %v3222_v16  ;;  %v3992_v2 = vld [vmem:[%s4813_s7 + $0x98] sm:$0xff]  }
 0x5f8   :  { %v4086_v17 = vpop.eup %4085 }
 0x5f9   :  { %v3223_v20 = vadd.f32 -1.0, %v4086_v17 }
 0x5fb   :  { %v1178_v22 = vsel %vm1168_vm11, %v1166_v9, %v3223_v20  ;;  %v3997_v9 = vld [vmem:[%s4813_s7 + $0xc0] sm:$0xff]  }
 0x5fc   :  { %v1211_v29 = vpack.c.bf16 %v1178_v22, %v1177_v21  ;;  %v3224_v22 = vld [vmem:[%s4814_s8 + $0x18] sm:$0x7] }
 0x5fe   :  { %1391 = vmatmul.mubr.bf16.vlgmr.msra.gmra.mxu0 %v1211_v29  ;;  %3696 = vmatmul.mubr.bf16.vlgmr.msra.gmra.mxu1 %v1211_v29  ;;  %v4638_v29 = vsub.s32 1, %v4357_v53 }
 0x5ff   :  { %1622 = vmatpush1.bf16.msra.mxu0 %v3951_v23  ;;  %3700 = vmatpush3.bf16.msra.mxu1 %v3954_v24  ;;  %v3249_v24 = vld [vmem:[%s4814_s8 + $0x1b] sm:$0x7] }
 0x600   :  { %1623 = vmatprep.subr.bf16.mxu0 %v3957_v31  ;;  %3701 = vmatprep.subr.bf16.mxu1 %v4219_v0  ;;  %v1218_v31 = vrot.slane %v3224_v22, %v4364_v55 }
 0x601   :  { %1653 = vmatprep.mubr.bf16.mxu0 %v4221_v60  ;;  %3715 = vmatprep.mubr.msk.bf16.mxu1 %vm4220_vm0, %v4219_v0 }
 0x603   :  { %1624 = vmatpush1.bf16.msra.mxu0 %v3955_v25  ;;  %3702 = vmatpush3.bf16.msra.mxu1 %v3958_v32  ;;  %v1481_v25 = vrot.slane %v3249_v24, %v4364_v55 }
 0x604   :  { %1625 = vmatprep.subr.bf16.mxu0 %v3961_v33  ;;  %3703 = vmatprep.subr.bf16.mxu1 %v4219_v0  ;;  %v1222_v33 = vrot.slane %v3224_v22, %v4638_v29 }
 0x607   :  { %1626 = vmatpush1.bf16.msra.mxu0 %v3959_v34  ;;  %3704 = vmatpush3.bf16.msra.mxu1 %v3962_v35  ;;  %v1485_v34 = vrot.slane %v3249_v24, %v4638_v29 }
 0x608   :  { %1627 = vmatprep.subr.bf16.mxu0 %v3965_v36  ;;  %3705 = vmatprep.subr.bf16.mxu1 %v4219_v0 }
 0x60b   :  { %1628 = vmatpush1.bf16.msra.mxu0 %v3963_v37  ;;  %3706 = vmatpush3.bf16.msra.mxu1 %v3966_v40 }
 0x60c   :  { %1629 = vmatprep.subr.bf16.mxu0 %v3969_v41  ;;  %3707 = vmatprep.subr.bf16.mxu1 %v4219_v0 }
 0x60f   :  { %1630 = vmatpush1.bf16.msra.mxu0 %v3967_v42  ;;  %3708 = vmatpush3.bf16.msra.mxu1 %v3970_v43 }
 0x610   :  { %1631 = vmatprep.subr.bf16.mxu0 %v3973_v46  ;;  %3709 = vmatprep.subr.bf16.mxu1 %v4219_v0 }
 0x613   :  { %1632 = vmatpush1.bf16.msra.mxu0 %v3971_v47  ;;  %3710 = vmatpush3.bf16.msra.mxu1 %v3974_v28 }
 0x614   :  { %1633 = vmatprep.subr.bf16.mxu0 %v3977_v30  ;;  %3711 = vmatprep.subr.bf16.mxu1 %v4219_v0 }
 0x617   :  { %1634 = vmatpush1.bf16.msra.mxu0 %v3975_v48  ;;  %3712 = vmatpush3.bf16.msra.mxu1 %v3978_v50 }
 0x618   :  { %1635 = vmatprep.subr.bf16.mxu0 %v3981_v26  ;;  %3713 = vmatprep.subr.bf16.mxu1 %v4219_v0 }
 0x61b   :  { %1636 = vmatpush1.bf16.msra.mxu0 %v3979_v27  ;;  %3714 = vmatpush3.bf16.msra.mxu1 %v3982_v52 }
 0x61c   :  { %3739 = vmatprep.subr.bf16.mxu1 %v4219_v0  ;;  %3719 = vmatprep.subr.bf16.mxu0 %v4219_v0 }
 0x61e   :  { %1654 = vmatmul.mubr.bf16.vlgmr.msra.gmra.mxu0 %v4392_v5  ;;  %3716 = vmatmul.mubr.bf16.vlgmr.msra.gmra.mxu1 %v4392_v5  ;;  %v3985_v5 = vld [vmem:[%s4813_s7 + $0xf0] sm:$0xff]  }
 0x61f   :  { %3735 = vmatprep.mubr.msk.bf16.mxu0 %vm4220_vm0, %v4219_v0  ;;  %3755 = vmatprep.mubr.msk.bf16.mxu1 %vm4220_vm0, %v4219_v0 }
 0x620   :  { %3740 = vmatpush3.bf16.msra.mxu1 %v3983_v56  ;;  %3720 = vmatpush3.bf16.msra.mxu0 %v3984_v57 }
 0x621   :  { %3741 = vmatprep.subr.bf16.mxu1 %v4219_v0  ;;  %3721 = vmatprep.subr.bf16.mxu0 %v4219_v0 }
 0x624   :  { %3742 = vmatpush3.bf16.msra.mxu1 %v3985_v5  ;;  %3722 = vmatpush3.bf16.msra.mxu0 %v3986_v58 }
 0x625   :  { %3743 = vmatprep.subr.bf16.mxu1 %v4219_v0  ;;  %3723 = vmatprep.subr.bf16.mxu0 %v4219_v0 }
 0x628   :  { %3744 = vmatpush3.bf16.msra.mxu1 %v3987_v59  ;;  %3724 = vmatpush3.bf16.msra.mxu0 %v3988_v61 }
 0x629   :  { %3745 = vmatprep.subr.bf16.mxu1 %v4219_v0  ;;  %3725 = vmatprep.subr.bf16.mxu0 %v4219_v0 }
 0x62c   :  { %3746 = vmatpush3.bf16.msra.mxu1 %v3989_v62  ;;  %3726 = vmatpush3.bf16.msra.mxu0 %v3990_v63 }
 0x62d   :  { %3747 = vmatprep.subr.bf16.mxu1 %v4219_v0  ;;  %3727 = vmatprep.subr.bf16.mxu0 %v4219_v0 }
 0x630   :  { %3748 = vmatpush3.bf16.msra.mxu1 %v3991_v1  ;;  %3728 = vmatpush3.bf16.msra.mxu0 %v3992_v2 }
 0x631   :  { %3749 = vmatprep.subr.bf16.mxu1 %v4219_v0  ;;  %3729 = vmatprep.subr.bf16.mxu0 %v4219_v0 }
 0x634   :  { %3750 = vmatpush3.bf16.msra.mxu1 %v3993_v6  ;;  %3730 = vmatpush3.bf16.msra.mxu0 %v3994_v7 }
 0x635   :  { %3751 = vmatprep.subr.bf16.mxu1 %v4219_v0  ;;  %3731 = vmatprep.subr.bf16.mxu0 %v4219_v0 }
 0x638   :  { %3752 = vmatpush3.bf16.msra.mxu1 %v3995_v8  ;;  %3732 = vmatpush3.bf16.msra.mxu0 %v3996_v51 }
 0x639   :  { %3753 = vmatprep.subr.bf16.mxu1 %v4219_v0  ;;  %3733 = vmatprep.subr.bf16.mxu0 %v4219_v0 }
 0x63c   :  { %3754 = vmatpush3.bf16.msra.mxu1 %v3997_v9  ;;  %3734 = vmatpush3.bf16.msra.mxu0 %v3998_v13 }
 0x63d   :  { %3771 = vmatprep.subr.bf16.mxu1 %v4219_v0 }
 0x6be   :  { %v4627_v14 = vpop.f32.mrf.mxu1  ;;  %v1392_v20 = vpop.f32.mrf.mxu0 }
 0x6bf   :  { %v1393_v37 = vadd.f32 %v1392_v20, %v1218_v31 }
 0x6c0   :  { %v3697_v15 = vpop.f32.mrf.mxu1  ;;  %v1394_v21 = vpop.f32.mrf.mxu0 }
 0x6c1   :  { %v1395_v43 = vadd.f32 %v1394_v21, %v1222_v33 }
 0x6c2   :  { %v4629_v16 = vpop.f32.mrf.mxu1  ;;  %v1396_v23 = vpop.f32.mrf.mxu0 }
 0x6c3   :  { %v1397_v48 = vadd.f32 %v1396_v23, %v1218_v31 }
 0x6c4   :  { %v3698_v17 = vpop.f32.mrf.mxu1  ;;  %v1398_v32 = vpop.f32.mrf.mxu0 }
 0x6c5   :  { %v1399_v59 = vadd.f32 %v1398_v32, %v1222_v33  ;;  %v4645_v32 = vsub.s32 2, %v4357_v53 }
 0x6de   :  { %v1655_v35 = vpop.f32.mrf.mxu0  ;;  %v1698_v36 = vpop.f32.mrf.mxu1 }
 0x6df   :  { %v1656_v40 = vadd.f32 %v1655_v35, %v1481_v25 }
 0x6e0   :  { %v1657_v41 = vpop.f32.mrf.mxu0  ;;  %v3717_v42 = vpop.f32.mrf.mxu1 }
 0x6e1   :  { %v1705_v46 = vadd.f32 %v1656_v40, %v1393_v37  ;;  %v1658_v47 = vadd.f32 %v1657_v41, %v1485_v34  ;;  %v1226_v37 = vrot.slane %v3224_v22, %v4645_v32 }
 0x6e2   :  { %v1659_v28 = vpop.f32.mrf.mxu0  ;;  %v1701_v30 = vpop.f32.mrf.mxu1 }
 0x6e3   :  { %v1707_v50 = vand.u32 2147483647, %v1705_v46  ;;  %v1727_v26 = vadd.f32 %v1658_v47, %v1395_v43  ;;  %v1660_v27 = vadd.f32 %v1659_v28, %v1481_v25  ;;  %vm1721_vm12 = vcmp.ge.f32.partialorder %v1705_v46, 0.0 }
 0x6e4   :  { %v1661_v52 = vpop.f32.mrf.mxu0  ;;  %v3718_v56 = vpop.f32.mrf.mxu1  ;;  %v1436_v47 = vadd.f32 %v4627_v14, %v1226_v37 }
 0x6e5   :  { %v1709_v57 = vsub.f32 0.0, %v1707_v50  ;;  %v1729_v5 = vand.u32 2147483647, %v1727_v26  ;;  %v1706_v58 = vadd.f32 %v1660_v27, %v1397_v48  ;;  %v1662_v61 = vadd.f32 %v1661_v52, %v1485_v34 }
 0x6e6   :  { %v1489_v34 = vrot.slane %v3249_v24, %v4645_v32  ;;  %v1439_v52 = vadd.f32 %v4629_v16, %v1226_v37  ;;  %vm1743_vm14 = vcmp.ge.f32.partialorder %v1727_v26, 0.0  ;;  %v3999_v26 = vld [vmem:[#allocation2 + $0x138] sm:$0xff]  }
 0x6e7   :  { %v1711_v62 = vmul.f32 1.442695, %v1709_v57  ;;  %v1731_v63 = vsub.f32 0.0, %v1729_v5  ;;  %v1708_v1 = vand.u32 2147483647, %v1706_v58  ;;  %v1728_v2 = vadd.f32 %v1662_v61, %v1399_v59 }
 0x6e8   :  { %v1699_v41 = vadd.f32 %v1698_v36, %v1489_v34  ;;  %vm1722_vm13 = vcmp.ge.f32.partialorder %v1706_v58, 0.0  ;;  %v1702_v53 = vadd.f32 %v1701_v30, %v1489_v34 }
 0x6e9   :  { %4087 = vpow2.f32 %v1711_v62  ;;  %v1710_v6 = vsub.f32 0.0, %v1708_v1  ;;  %v1730_v7 = vand.u32 2147483647, %v1728_v2  ;;  %v1733_v8 = vmul.f32 1.442695, %v1731_v63 }
 0x6ea   :  { %vm1744_vm15 = vcmp.ge.f32.partialorder %v1728_v2, 0.0 }
 0x6eb   :  { %v1713_v51 = vmul.f32 1.442695, %v1710_v6  ;;  %v1732_v9 = vsub.f32 0.0, %v1730_v7 }
 0x6ed   :  { %4089 = vpow2.f32 %v1713_v51  ;;  %v1735_v13 = vmul.f32 1.442695, %v1732_v9  ;;  %v4001_v9 = vld [vmem:[#allocation2 + $0x128] sm:$0xff]  }
 0x6ee   :  { %4091 = vpow2.f32 %v1733_v8 }
 0x6ef   :  { %4093 = vpow2.f32 %v1735_v13  ;;  %v4002_v13 = vld [vmem:[#allocation2 + $0x120] sm:$0xff]  }
 0x6f6   :  { %v4088_v15 = vpop.eup %4087 }
 0x6f7   :  { %v1715_v17 = vadd.f32 1.0, %v4088_v15 }
 0x6f9   :  { %4095 = vrcp.f32 %v1715_v17  ;;  %v4004_v17 = vld [vmem:[#allocation2 + $0x110] sm:$0xff]  }
 0x6fa   :  { %v4090_v20 = vpop.eup %4089 }
 0x6fb   :  { %v1716_v21 = vadd.f32 1.0, %v4090_v20  ;;  %v4092_v23 = vpop.eup %4091 }
 0x6fc   :  { %v1737_v31 = vadd.f32 1.0, %v4092_v23  ;;  %v4094_v25 = vpop.eup %4093 }
 0x6fd   :  { %4097 = vrcp.f32 %v1716_v21  ;;  %v1738_v33 = vadd.f32 1.0, %v4094_v25  ;;  %v4006_v21 = vld [vmem:[#allocation2 + $0x100] sm:$0xff]  }
 0x6fe   :  { %4099 = vrcp.f32 %v1737_v31 }
 0x6ff   :  { %4101 = vrcp.f32 %v1738_v33 }
 0x706   :  { %v4096_v35 = vpop.eup %4095 }
 0x707   :  { %v1723_v40 = vmul.f32 %v4096_v35, %v4088_v15  ;;  %v4003_v15 = vld [vmem:[#allocation2 + $0x118] sm:$0xff]  }
 0x709   :  { %v1725_v42 = vsel %vm1721_vm12, %v4096_v35, %v1723_v40 }
 0x70a   :  { %v4098_v43 = vpop.eup %4097  ;;  %v1749_v28 = vmul.f32 %v1725_v42, %v1699_v41 }
 0x70b   :  { %v1724_v48 = vmul.f32 %v4098_v43, %v4090_v20  ;;  %v4100_v56 = vpop.eup %4099  ;;  %v4005_v20 = vld [vmem:[#allocation2 + $0x108] sm:$0xff]  }
 0x70c   :  { %v1751_v50 = vadd.f32 %v1749_v28, %v1436_v47  ;;  %v1745_v57 = vmul.f32 %v4100_v56, %v4092_v23  ;;  %v4102_v46 = vpop.eup %4101  ;;  %v3327_v47 = vld [vmem:[%s4814_s8 + $0x9] sm:$0x7] }
 0x70d   :  { %v1726_v27 = vsel %vm1722_vm13, %v4098_v43, %v1724_v48  ;;  %v1746_v5 = vmul.f32 %v4102_v46, %v4094_v25  ;;  %v4146_v43 = vld [vmem:[%s4808_s2 + $0x8] sm:$0xff]   ;;  %v2121_v48 = vrot.slane %v3327_v47, %v4364_v55 }
 0x70e   :  { %4103 = vtanh.f32 %v1751_v50  ;;  %v1750_v24 = vmul.f32 %v1726_v27, %v1702_v53  ;;  %v1747_v36 = vsel %vm1743_vm14, %v4100_v56, %v1745_v57  ;;  %v3326_v57 = vld [vmem:[%s4814_s8 + $0x15] sm:$0x7] }
 0x70f   :  { %v1755_v59 = vsub.f32 1.0, %v1747_v36  ;;  %v1748_v61 = vsel %vm1744_vm15, %v4102_v46, %v1746_v5  ;;  %v1759_v30 = vmul.f32 %v1747_v36, %v4385_v3  ;;  %v4000_v3 = vld [vmem:[#allocation2 + $0x130] sm:$0xff]   ;;  %v2084_v36 = vrot.slane %v3326_v57, %v4364_v55 }
 0x710   :  { %v1752_v22 = vadd.f32 %v1750_v24, %v1439_v52  ;;  %v1756_v58 = vsub.f32 1.0, %v1748_v61  ;;  %v1760_v6 = vmul.f32 %v1748_v61, %v4387_v4  ;;  %v4145_v4 = vld [vmem:[%s4808_s2] sm:$0xff]  }
 0x712   :  { %4105 = vtanh.f32 %v1752_v22 }
 0x71b   :  { %v4104_v14 = vpop.eup %4103 }
 0x71c   :  { %v1757_v62 = vmul.f32 %v4104_v14, %v1755_v59 }
 0x71e   :  { %v1761_v16 = vadd.f32 %v1759_v30, %v1757_v62 }
 0x71f   :  { %v4106_v63 = vpop.eup %4105 }
 0x720   :  { %v1758_v1 = vmul.f32 %v4106_v63, %v1756_v58  ;;  %v4653_v8 = vmax.f32 %v1761_v16, 0.0 }
 0x722   :  { %v1762_v7 = vadd.f32 %v1760_v6, %v1758_v1 }
 0x724   :  { %v4655_v51 = vmax.f32 %v1762_v7, 0.0 }
 0x726   :  { %v4659_v2 = vpack.c.bf16 %v4655_v51, %v4653_v8 }
 0x728   :  { %3736 = vmatmul.mubr.bf16.vlgmr.msra.gmra.mxu0 %v4659_v2  ;;  %3756 = vmatmul.mubr.bf16.vlgmr.msra.gmra.mxu1 %v4659_v2 }
 0x729   :  { %3772 = vmatpush3.bf16.msra.mxu1 %v3999_v26  ;;  %3787 = vmatprep.mubr.msk.bf16.mxu1 %vm4220_vm0, %v4219_v0 }
 0x72a   :  { %3773 = vmatprep.subr.bf16.mxu1 %v4219_v0  ;;  %3761 = vmatprep.mubr.msk.bf16.mxu0 %vm434_vm1, %v4145_v4 }
 0x72d   :  { %3774 = vmatpush3.bf16.msra.mxu1 %v4000_v3 }
 0x72e   :  { %3775 = vmatprep.subr.bf16.mxu1 %v4219_v0 }
 0x731   :  { %3776 = vmatpush3.bf16.msra.mxu1 %v4001_v9 }
 0x732   :  { %3777 = vmatprep.subr.bf16.mxu1 %v4219_v0 }
 0x735   :  { %3778 = vmatpush3.bf16.msra.mxu1 %v4002_v13 }
 0x736   :  { %3779 = vmatprep.subr.bf16.mxu1 %v4219_v0 }
 0x739   :  { %3780 = vmatpush3.bf16.msra.mxu1 %v4003_v15 }
 0x73a   :  { %3781 = vmatprep.subr.bf16.mxu1 %v4219_v0 }
 0x73d   :  { %3782 = vmatpush3.bf16.msra.mxu1 %v4004_v17 }
 0x73e   :  { %3783 = vmatprep.subr.bf16.mxu1 %v4219_v0 }
 0x741   :  { %3784 = vmatpush3.bf16.msra.mxu1 %v4005_v20 }
 0x742   :  { %3785 = vmatprep.subr.bf16.mxu1 %v4219_v0 }
 0x745   :  { %3786 = vmatpush3.bf16.msra.mxu1 %v4006_v21 }
 0x746   :  { %3805 = vmatprep.subr.bf16.mxu1 %v4219_v0 }
 0x748   :  { %3788 = vmatmul.mubr.bf16.vlgmr.msra.gmra.mxu1 %v4659_v2 }
 0x749   :  { %3821 = vmatprep.mubr.msk.bf16.mxu1 %vm4220_vm0, %v4219_v0 }
 0x7e8   :  { %v1865_v23 = vpop.f32.mrf.mxu0  ;;  %v1972_v31 = vpop.f32.mrf.mxu1 }
 0x7ea   :  { %v3737_v25 = vpop.f32.mrf.mxu0  ;;  %v3757_v33 = vpop.f32.mrf.mxu1 }
 0x7ec   :  { %v1868_v34 = vpop.f32.mrf.mxu0  ;;  %v1975_v35 = vpop.f32.mrf.mxu1 }
 0x7ed   :  { %v1979_v37 = vpack.c.bf16 %v1975_v35, %v1972_v31  ;;  %v1872_v42 = vpack.c.bf16 %v1868_v34, %v1865_v23 }
 0x7ee   :  { %v3738_v40 = vpop.f32.mrf.mxu0  ;;  %v3758_v41 = vpop.f32.mrf.mxu1 }
 0x7ef   :  { %3759 = vmatprep.subr.bf16.mxu0 %v1979_v37 }
 0x7f0   :  { %3760 = vmatpush3.bf16.msra.mxu0 %v1979_v37 }
 0x7f1   :  { %3765 = vmatprep.subr.bf16.mxu0 %v1872_v42 }
 0x7f3   :  { %3762 = vmatmul.mubr.msk.bf16.vlgmr.msra.gmra.mxu0 %vm434_vm1, %v4146_v43 }
 0x7f4   :  { %3766 = vmatpush3.bf16.msra.mxu0 %v1872_v42  ;;  %3767 = vmatprep.mubr.msk.bf16.mxu0 %vm434_vm1, %v4420_v12 }
 0x7fb   :  { %3768 = vmatmul.mubr.msk.bf16.vlgmr.msra.gmra.mxu0 %vm434_vm1, %v4442_v49 }
 0x7fc   :  { %3793 = vmatprep.mubr.msk.bf16.mxu0 %vm434_vm1, %v4145_v4 }
 0x808   :  { %v2205_v28 = vpop.f32.mrf.mxu1 }
 0x809   :  { %v2206_v27 = vadd.f32 %v2205_v28, %v2121_v48 }
 0x80a   :  { %v3789_v50 = vpop.f32.mrf.mxu1 }
 0x80c   :  { %v2208_v53 = vpop.f32.mrf.mxu1 }
 0x80d   :  { %v2209_v52 = vadd.f32 %v2208_v53, %v2121_v48 }
 0x80e   :  { %v3790_v24 = vpop.f32.mrf.mxu1 }
 0x80f   :  { %v2212_v56 = vpack.c.bf16 %v2209_v52, %v2206_v27 }
 0x811   :  { %3791 = vmatprep.subr.bf16.mxu0 %v2212_v56 }
 0x812   :  { %3792 = vmatpush3.bf16.msra.mxu0 %v2212_v56 }
 0x813   :  { %3797 = vmatprep.subr.bf16.mxu0 %v4219_v0 }
 0x815   :  { %3794 = vmatmul.mubr.msk.bf16.vlgmr.msra.gmra.mxu0 %vm434_vm1, %v4146_v43 }
 0x816   :  { %3801 = vmatprep.mubr.msk.bf16.mxu0 %vm4220_vm0, %v4219_v0 }
 0x8b3   :  { %v3763_v12 = vpop.f32.mrf.mxu0 }
 0x8b5   :  { %v2014_v49 = vpop.f32.mrf.mxu0 }
 0x8b7   :  { %v3764_v22 = vpop.f32.mrf.mxu0 }
 0x8b9   :  { %v2017_v46 = vpop.f32.mrf.mxu0 }
 0x8bb   :  { %v3769_v5 = vpop.f32.mrf.mxu0 }
 0x8bc   :  { %v2072_v59 = vadd.f32 %v3769_v5, %v3763_v12 }
 0x8bd   :  { %v2063_v14 = vpop.f32.mrf.mxu0 }
 0x8be   :  { %v2088_v61 = vadd.f32 %v2084_v36, %v2072_v59  ;;  %v2064_v62 = vadd.f32 %v2063_v14, %v2014_v49 }
 0x8bf   :  { %v3770_v30 = vpop.f32.mrf.mxu0 }
 0x8c0   :  { %v2086_v58 = vadd.f32 %v2084_v36, %v2064_v62  ;;  %v2075_v63 = vadd.f32 %v3770_v30, %v3764_v22  ;;  %v2092_v1 = vmul.f32 0.01, %v2088_v61 }
 0x8c1   :  { %v2066_v16 = vpop.f32.mrf.mxu0 }
 0x8c2   :  { %v2089_v6 = vadd.f32 %v2084_v36, %v2075_v63  ;;  %v2067_v7 = vadd.f32 %v2066_v16, %v2017_v46  ;;  %v2090_v26 = vmul.f32 0.01, %v2086_v58  ;;  %v2096_v9 = vmax.f32 %v2088_v61, %v2092_v1 }
 0x8c4   :  { %v2093_v3 = vmul.f32 0.01, %v2089_v6  ;;  %v2087_v4 = vadd.f32 %v2084_v36, %v2067_v7  ;;  %v2094_v17 = vmax.f32 %v2086_v58, %v2090_v26 }
 0x8c6   :  { %v2097_v13 = vmax.f32 %v2089_v6, %v2093_v3  ;;  %v2091_v15 = vmul.f32 0.01, %v2087_v4 }
 0x8c8   :  { %v2095_v20 = vmax.f32 %v2087_v4, %v2091_v15  ;;  %v2263_v21 = vpack.c.bf16 %v2097_v13, %v2096_v9 }
 0x8ca   :  { %2270 = vperm.xlu1 %3861, %v2263_v21   ;;  %v2262_v23 = vpack.c.bf16 %v2095_v20, %v2094_v17 }
 0x8cc   :  { %2266 = vperm.xlu0 %3863, %v2262_v23  }
 0x945   :  { %v2271_v31 = vpop.permute.xlu1 %2270 }
 0x946   :  { %v2294_v25 = vrot.slane %v2271_v31, %v4462_v38  ;;  %v2301_v33 = vrot.slane %v2271_v31, %v4465_v39 }
 0x947   :  { %v2267_v34 = vpop.permute.xlu0 %2266 }
 0x948   :  { %v2308_v35 = vsel %vm82_vm4, %v2294_v25, 4048220490  ;;  %v2309_v37 = vsel %vm83_vm5, %v2301_v33, 4048220490  ;;  %v2280_v40 = vrot.slane %v2267_v34, %v4462_v38  ;;  %v2287_v41 = vrot.slane %v2267_v34, %v4465_v39 }
 0x949   :  { %v3339_v42 = vcombine.low %v2308_v35, %v2309_v37 }
 0x94a   :  { %v2306_v43 = vsel %vm80_vm2, %v2280_v40, 4048220490  ;;  %v2307_v47 = vsel %vm81_vm3, %v2287_v41, 4048220490 }
 0x94b   :  { %v3338_v28 = vcombine.low %v2306_v43, %v2307_v47  ;;  %v2324_v48 = vsel %vm434_vm1, %v3339_v42, 4286644096 }
 0x94d   :  { %v2321_v50 = vsel %vm434_vm1, %v3338_v28, 4286644096 }
 0x94e   :  { %v2326_v53 = vmax.bf16 %v2324_v48, %v2321_v50 }
 0x950   :  { %v2327_v27 = vunpack.i.l.bf16 %v2326_v53  ;;  %v2328_v52 = vunpack.i.h.bf16 %v2326_v53 }
 0x952   :  { %v2329_v24 = vmax.f32 %v2327_v27, %v2328_v52  ;;  %v4007_v52 = vld [vmem:[#allocation5 + $0x228] ss:$12 sps:$4 sm:$0xff]  }
 0x954   :  { %v2330_v56 = vrot.slane %v2329_v24, 4 }
 0x956   :  { %v2331_v38 = vmax.f32 %v2329_v24, %v2330_v56  ;;  %v4009_v24 = vld [vmem:[#allocation5 + $0x22c] ss:$12 sps:$4 sm:$0xff]   ;;  %v4010_v56 = vld [vmem:[#allocation5 + $0x230] ss:$12 sps:$4 sm:$0xff]  }
 0x957   :  { %3806 = vmatpush3.bf16.msra.mxu1 %v4010_v56  ;;  %v4053_v56 = vld [vmem:[#allocation5 + $0x2a4] ss:$12 sps:$4 sm:$0xff]  }
 0x958   :  { %v2332_v12 = vrot.slane %v2331_v38, 2  ;;  %3807 = vmatprep.subr.bf16.mxu1 %v4219_v0 }
 0x95a   :  { %v2333_v39 = vmax.f32 %v2331_v38, %v2332_v12 }
 0x95c   :  { %v2334_v49 = vrot.slane %v2333_v39, 1 }
 0x95e   :  { %v2335_v22 = vmax.f32 %v2333_v39, %v2334_v49  ;;  %v4013_v49 = vld [vmem:[#allocation5 + $0x214] ss:$12 sps:$4 sm:$0xff]  }
 0x960   :  { %v2336_v57 = vpack.i.bf16 %v2335_v22, %v2335_v22  ;;  %v4011_v22 = vld [vmem:[#allocation5 + $0x210] ss:$12 sps:$4 sm:$0xff]  }
 0x962   :  { %v3340_v46 = vcombine.low %v2336_v57, %v2336_v57  ;;  %v4014_v57 = vld [vmem:[#allocation5 + $0x218] ss:$12 sps:$4 sm:$0xff]  }
 0x963   :  { %3808 = vmatpush3.bf16.msra.mxu1 %v4014_v57  ;;  %v4062_v57 = vld [vmem:[#allocation5 + $0x278] ss:$12 sps:$4 sm:$0xff]  }
 0x964   :  { %v2343_v36 = vsel %vm82_vm4, %v3340_v46, 4048220490  ;;  %v2344_v5 = vsel %vm83_vm5, %v3340_v46, 4048220490  ;;  %v2341_v59 = vsel %vm80_vm2, %v3340_v46, 4048220490  ;;  %3809 = vmatprep.subr.bf16.mxu1 %v4219_v0 }
 0x965   :  { %v3342_v14 = vcombine.low %v2343_v36, %v2344_v5  ;;  %v2342_v61 = vsel %vm81_vm3, %v3340_v46, 4048220490  ;;  %v4017_v5 = vld [vmem:[#allocation5 + $0x1fc] ss:$12 sps:$4 sm:$0xff]  }
 0x966   :  { %v3341_v62 = vcombine.low %v2341_v59, %v2342_v61  ;;  %v4015_v59 = vld [vmem:[#allocation5 + $0x1f8] ss:$12 sps:$4 sm:$0xff]  }
 0x967   :  { %v2361_v30 = vsel %vm434_vm1, %v3342_v14, 4286644096  ;;  %v4018_v14 = vld [vmem:[#allocation5 + $0x200] ss:$12 sps:$4 sm:$0xff]  }
 0x968   :  { %2363 = vmax.xlane.bf16.xlu1 %v2361_v30  ;;  %v2356_v58 = vsel %vm434_vm1, %v3341_v62, 4286644096  ;;  %3810 = vmatpush3.bf16.msra.mxu1 %v4018_v14  ;;  %v4021_v30 = vld [vmem:[#allocation5 + $0x1e4] ss:$12 sps:$4 sm:$0xff]   ;;  %v4067_v14 = vld [vmem:[#allocation5 + $0x240] ss:$12 sps:$4 sm:$0xff]  }
 0x969   :  { %2358 = vmax.xlane.bf16.xlu0 %v2356_v58  ;;  %3811 = vmatprep.subr.bf16.mxu1 %v4219_v0  ;;  %v4019_v58 = vld [vmem:[#allocation5 + $0x1e0] ss:$12 sps:$4 sm:$0xff]  }
 0x9f5   :  { %v2364_v63 = vpop.xlane.xlu1 %2363 }
 0x9f6   :  { %v2367_v44 = vunpack.c.l.bf16 %v2364_v63  ;;  %v2368_v16 = vunpack.c.h.bf16 %v2364_v63  ;;  %v2359_v1 = vpop.xlane.xlu0 %2358  ;;  %v4022_v63 = vld [vmem:[#allocation5 + $0x1e8] ss:$12 sps:$4 sm:$0xff]  }
 0x9f7   :  { %v2365_v45 = vunpack.c.l.bf16 %v2359_v1  ;;  %v2366_v6 = vunpack.c.h.bf16 %v2359_v1  ;;  %3812 = vmatpush3.bf16.msra.mxu1 %v4022_v63  ;;  %v4026_v1 = vld [vmem:[#allocation5 + $0x1d0] ss:$12 sps:$4 sm:$0xff]  }
 0x9f8   :  { %v2371_v7 = vsub.f32 %v2096_v9, %v2367_v44  ;;  %v2372_v10 = vsub.f32 %v2097_v13, %v2368_v16  ;;  %v3795_v9 = vpop.f32.mrf.mxu0  ;;  %v4025_v44 = vld [vmem:[#allocation5 + $0x1cc] ss:$12 sps:$4 sm:$0xff]   ;;  %3813 = vmatprep.subr.bf16.mxu1 %v4219_v0  ;;  %v4023_v16 = vld [vmem:[#allocation5 + $0x1c8] ss:$12 sps:$4 sm:$0xff]  }
 0x9f9   :  { %v2369_v26 = vsub.f32 %v2094_v17, %v2365_v45  ;;  %v2370_v3 = vsub.f32 %v2095_v20, %v2366_v6  ;;  %v4029_v45 = vld [vmem:[#allocation5 + $0x1b4] ss:$12 sps:$4 sm:$0xff]   ;;  %v4027_v6 = vld [vmem:[#allocation5 + $0x1b0] ss:$12 sps:$4 sm:$0xff]  }
 0x9fa   :  { %v2377_v4 = vmul.f32 1.442695, %v2371_v7  ;;  %v2379_v11 = vmul.f32 1.442695, %v2372_v10  ;;  %v2247_v13 = vpop.f32.mrf.mxu0  ;;  %v4030_v7 = vld [vmem:[#allocation5 + $0x1b8] ss:$12 sps:$4 sm:$0xff]  }
 0x9fb   :  { %v2375_v15 = vmul.f32 1.442695, %v2370_v3  ;;  %v2373_v21 = vmul.f32 1.442695, %v2369_v26  ;;  %3814 = vmatpush3.bf16.msra.mxu1 %v4026_v1  ;;  %v4033_v10 = vld [vmem:[#allocation5 + $0x19c] ss:$12 sps:$4 sm:$0xff]  }
 0x9fc   :  { %4107 = vpow2.f32 %v2377_v4  ;;  %v3796_v17 = vpop.f32.mrf.mxu0  ;;  %3815 = vmatprep.subr.bf16.mxu1 %v4219_v0  ;;  %v4031_v26 = vld [vmem:[#allocation5 + $0x198] ss:$12 sps:$4 sm:$0xff]   ;;  %v4034_v3 = vld [vmem:[#allocation5 + $0x1a0] ss:$12 sps:$4 sm:$0xff]  }
 0x9fd   :  { %4109 = vpow2.f32 %v2379_v11  ;;  %v4037_v4 = vld [vmem:[#allocation5 + $0x184] ss:$12 sps:$4 sm:$0xff]   ;;  %v4035_v11 = vld [vmem:[#allocation5 + $0x180] ss:$12 sps:$4 sm:$0xff]  }
 0x9fe   :  { %4111 = vpow2.f32 %v2375_v15  ;;  %v2250_v41 = vpop.f32.mrf.mxu0  ;;  %v4038_v15 = vld [vmem:[#allocation5 + $0x188] ss:$12 sps:$4 sm:$0xff]   ;;  %v3346_v1 = vld [vmem:[%s4814_s8 + $0x1e] sm:$0x7] }
 0x9ff   :  { %4113 = vpow2.f32 %v2373_v21  ;;  %3816 = vmatpush3.bf16.msra.mxu1 %v4030_v7  ;;  %v4041_v21 = vld [vmem:[#allocation5 + $0x2ec] ss:$12 sps:$4 sm:$0xff]  }
 0xa00   :  { %3817 = vmatprep.subr.bf16.mxu1 %v4219_v0 }
 0xa03   :  { %3818 = vmatpush3.bf16.msra.mxu1 %v4034_v3 }
 0xa04   :  { %3819 = vmatprep.subr.bf16.mxu1 %v4219_v0 }
 0xa07   :  { %3820 = vmatpush3.bf16.msra.mxu1 %v4038_v15 }
 0xa08   :  { %3825 = vmatprep.subr.bf16.mxu1 %v4219_v0 }
 0xa09   :  { %v4108_v23 = vpop.eup %4107 }
 0xa0a   :  { %v4110_v31 = vpop.eup %4109  ;;  %2393 = vperm.xlu0 %3863, %v4108_v23  }
 0xa0b   :  { %2398 = vperm.xlu1 %3861, %v4110_v31   ;;  %v4112_v25 = vpop.eup %4111 }
 0xa0c   :  { %v4114_v33 = vpop.eup %4113 }
 0xa0e   :  { %2388 = vperm.xlu0 %3863, %v4112_v25  }
 0xa0f   :  { %2383 = vperm.xlu1 %3861, %v4114_v33  }
 0xa12   :  { %3865 = vset.pattern.permute.xlu0 %v4224_v19 }
 0xa13   :  { %3864 = vset.pattern.permute.xlu1 %v4224_v19 }
 0xa85   :  { %v2394_v20 = vpop.permute.xlu0 %2393 }
 0xa86   :  { %v2399_v34 = vpop.permute.xlu1 %2398  ;;  %v2403_v35 = vmul.f32 %v3795_v9, %v2394_v20 }
 0xa87   :  { %v2404_v37 = vmul.f32 %v3796_v17, %v2399_v34 }
 0xa88   :  { %v2407_v40 = vsel %vm1086_vm6, %v2394_v20, %v2403_v35 }
 0xa89   :  { %v2408_v42 = vsel %vm1086_vm6, %v2399_v34, %v2404_v37  ;;  %v2389_v43 = vpop.permute.xlu0 %2388 }
 0xa8a   :  { %v2410_v47 = vpack.c.bf16 %v2408_v42, %v2407_v40  ;;  %v2384_v28 = vpop.permute.xlu1 %2383  ;;  %v2402_v48 = vmul.f32 %v2389_v43, %v2250_v41 }
 0xa8b   :  { %v2401_v50 = vmul.f32 %v2384_v28, %v2247_v13 }
 0xa8c   :  { %v2406_v19 = vsel %vm1086_vm6, %v2389_v43, %v2402_v48  ;;  %3798 = vmatpush3.bf16.msra.mxu0 %v2410_v47  ;;  %v4042_v48 = vld [vmem:[#allocation5 + $0x2f0] ss:$12 sps:$4 sm:$0xff]  }
 0xa8d   :  { %v2405_v53 = vsel %vm1086_vm6, %v2384_v28, %v2401_v50  ;;  %3799 = vmatprep.subr.bf16.mxu0 %v4219_v0  ;;  %v4039_v28 = vld [vmem:[#allocation5 + $0x2e8] ss:$12 sps:$4 sm:$0xff]  }
 0xa8e   :  { %v2409_v27 = vpack.c.bf16 %v2406_v19, %v2405_v53  ;;  %v4045_v19 = vld [vmem:[#allocation5 + $0x2d4] ss:$12 sps:$4 sm:$0xff]   ;;  %v4046_v53 = vld [vmem:[#allocation5 + $0x2d8] ss:$12 sps:$4 sm:$0xff]  }
 0xa90   :  { %3800 = vmatpush3.bf16.msra.mxu0 %v2409_v27  ;;  %v4049_v27 = vld [vmem:[#allocation5 + $0x2bc] ss:$12 sps:$4 sm:$0xff]  }
 0xa91   :  { %2666 = vmatprep.subr.bf16.mxu0 %v4009_v24  ;;  %v4050_v24 = vld [vmem:[#allocation5 + $0x2c0] ss:$12 sps:$4 sm:$0xff]  }
 0xa93   :  { %3802 = vmatmul.mubr.msk.bf16.vlgmr.msra.gmra.mxu0 %vm1100_vm7, %v4517_v18 }
 0xa94   :  { %2698 = vmatprep.mubr.bf16.mxu0 %v4221_v60  ;;  %2667 = vmatpush1.bf16.msra.mxu0 %v4007_v52  ;;  %v4047_v52 = vld [vmem:[#allocation5 + $0x2b8] ss:$12 sps:$4 sm:$0xff]  }
 0xa95   :  { %2668 = vmatprep.subr.bf16.mxu0 %v4013_v49  ;;  %v4061_v49 = vld [vmem:[#allocation5 + $0x274] ss:$12 sps:$4 sm:$0xff]  }
 0xa98   :  { %2669 = vmatpush1.bf16.msra.mxu0 %v4011_v22  ;;  %v4059_v22 = vld [vmem:[#allocation5 + $0x270] ss:$12 sps:$4 sm:$0xff]  }
 0xa99   :  { %2670 = vmatprep.subr.bf16.mxu0 %v4017_v5  ;;  %v4066_v5 = vld [vmem:[#allocation5 + $0x260] ss:$12 sps:$4 sm:$0xff]  }
 0xa9c   :  { %2671 = vmatpush1.bf16.msra.mxu0 %v4015_v59  ;;  %v4069_v59 = vld [vmem:[#allocation5 + $0x244] ss:$12 sps:$4 sm:$0xff]  }
 0xa9d   :  { %2672 = vmatprep.subr.bf16.mxu0 %v4021_v30 }
 0xaa0   :  { %2673 = vmatpush1.bf16.msra.mxu0 %v4019_v58 }
 0xaa1   :  { %2674 = vmatprep.subr.bf16.mxu0 %v4025_v44 }
 0xaa4   :  { %2675 = vmatpush1.bf16.msra.mxu0 %v4023_v16 }
 0xaa5   :  { %2676 = vmatprep.subr.bf16.mxu0 %v4029_v45 }
 0xaa8   :  { %2677 = vmatpush1.bf16.msra.mxu0 %v4027_v6  ;;  %v2526_v6 = vrot.slane %v3346_v1, %v4364_v55 }
 0xaa9   :  { %2678 = vmatprep.subr.bf16.mxu0 %v4033_v10  ;;  %v2530_v10 = vrot.slane %v3346_v1, %v4638_v29 }
 0xaac   :  { %2679 = vmatpush1.bf16.msra.mxu0 %v4031_v26 }
 0xaad   :  { %2680 = vmatprep.subr.bf16.mxu0 %v4037_v4 }
 0xab0   :  { %2681 = vmatpush1.bf16.msra.mxu0 %v4035_v11 }
 0xab1   :  { %2929 = vmatprep.subr.bf16.mxu0 %v4041_v21 }
 0xb53   :  { %v4740_v38 = vpop.f32.mrf.mxu0 }
 0xb54   :  { %4115 = vrcp.f32 %v4740_v38  ;;  %vm2454_vm1 = vcmp.gt.f32.partialorder %v4740_v38, 0.0  ;;  %v2452_v31 = vsel %vm1086_vm6, 0.0, %v4740_v38  ;;  %v4051_v38 = vld [vmem:[#allocation5 + $0x2a0] ss:$12 sps:$4 sm:$0xff]  }
 0xb55   :  { %v3803_v12 = vpop.f32.mrf.mxu0 }
 0xb56   :  { %v4054_v12 = vld [vmem:[#allocation5 + $0x2a8] ss:$12 sps:$4 sm:$0xff]  }
 0xb57   :  { %v4743_v39 = vpop.f32.mrf.mxu0 }
 0xb58   :  { %4117 = vrcp.f32 %v4743_v39  ;;  %vm2455_vm2 = vcmp.gt.f32.partialorder %v4743_v39, 0.0  ;;  %v2453_v13 = vsel %vm1086_vm6, 0.0, %v4743_v39  ;;  %v4057_v39 = vld [vmem:[#allocation5 + $0x28c] ss:$12 sps:$4 sm:$0xff]  }
 0xb59   :  { %v3804_v18 = vpop.f32.mrf.mxu0 }
 0xb5a   :  { %v4058_v18 = vld [vmem:[#allocation5 + $0x290] ss:$12 sps:$4 sm:$0xff]  }
 0xb61   :  { %v4116_v46 = vpop.eup %4115 }
 0xb62   :  { %v2460_v36 = vsel %vm2454_vm1, %v4116_v46, 0.0  ;;  %v4065_v46 = vld [vmem:[#allocation5 + $0x25c] ss:$12 sps:$4 sm:$0xff]  }
 0xb63   :  { %2464 = vperm.xlu1 %3864, %v2460_v36   ;;  %v4063_v36 = vld [vmem:[#allocation5 + $0x258] ss:$12 sps:$4 sm:$0xff]  }
 0xb65   :  { %v4118_v61 = vpop.eup %4117 }
 0xb66   :  { %v2461_v62 = vsel %vm2455_vm2, %v4118_v61, 0.0  ;;  %v4070_v61 = vld [vmem:[#allocation5 + $0x248] ss:$12 sps:$4 sm:$0xff]  }
 0xb67   :  { %2469 = vperm.xlu0 %3865, %v2461_v62  }
 0xbde   :  { %v2465_v23 = vpop.permute.xlu1 %2464 }
 0xbdf   :  { %v2472_v25 = vmul.f32 %v2465_v23, %v2452_v31 }
 0xbe1   :  { %v2476_v33 = vmin.f32 %v2472_v25, 0.0  ;;  %vm2474_vm3 = vcmp.gt.f32.partialorder %v2472_v25, 0.0 }
 0xbe2   :  { %v2470_v9 = vpop.permute.xlu0 %2469 }
 0xbe3   :  { %v2478_v17 = vmul.f32 1.442695, %v2476_v33  ;;  %v2473_v20 = vmul.f32 %v2470_v9, %v2453_v13 }
 0xbe5   :  { %4119 = vpow2.f32 %v2478_v17  ;;  %v2477_v34 = vmin.f32 %v2473_v20, 0.0  ;;  %vm2475_vm4 = vcmp.gt.f32.partialorder %v2473_v20, 0.0 }
 0xbe7   :  { %v2480_v35 = vmul.f32 1.442695, %v2477_v34 }
 0xbe9   :  { %4121 = vpow2.f32 %v2480_v35 }
 0xbf2   :  { %v4120_v37 = vpop.eup %4119 }
 0xbf3   :  { %v3344_v40 = vadd.f32 -1.0, %v4120_v37 }
 0xbf5   :  { %v2484_v43 = vsel %vm2474_vm3, %v2472_v25, %v3344_v40 }
 0xbf6   :  { %v4122_v41 = vpop.eup %4121 }
 0xbf7   :  { %v3345_v42 = vadd.f32 -1.0, %v4122_v41 }
 0xbf9   :  { %v2485_v47 = vsel %vm2475_vm4, %v2473_v20, %v3345_v42 }
 0xbfa   :  { %v2519_v50 = vpack.c.bf16 %v2485_v47, %v2484_v43 }
 0xbfc   :  { %2699 = vmatmul.mubr.bf16.vlgmr.msra.gmra.mxu0 %v2519_v50  ;;  %3822 = vmatmul.mubr.bf16.vlgmr.msra.gmra.mxu1 %v2519_v50 }
 0xbfd   :  { %2930 = vmatpush1.bf16.msra.mxu0 %v4039_v28  ;;  %3826 = vmatpush3.bf16.msra.mxu1 %v4042_v48 }
 0xbfe   :  { %2931 = vmatprep.subr.bf16.mxu0 %v4045_v19  ;;  %3827 = vmatprep.subr.bf16.mxu1 %v4219_v0 }
 0xbff   :  { %2961 = vmatprep.mubr.bf16.mxu0 %v4221_v60  ;;  %3841 = vmatprep.mubr.msk.bf16.mxu1 %vm4220_vm0, %v4219_v0  ;;  %v4055_v60 = vld [vmem:[#allocation5 + $0x288] ss:$12 sps:$4 sm:$0xff]  }
 0xc01   :  { %2932 = vmatpush1.bf16.msra.mxu0 %v4043_v54  ;;  %3828 = vmatpush3.bf16.msra.mxu1 %v4046_v53 }
 0xc02   :  { %2933 = vmatprep.subr.bf16.mxu0 %v4049_v27  ;;  %3829 = vmatprep.subr.bf16.mxu1 %v4219_v0 }
 0xc05   :  { %2934 = vmatpush1.bf16.msra.mxu0 %v4047_v52  ;;  %3830 = vmatpush3.bf16.msra.mxu1 %v4050_v24 }
 0xc06   :  { %2935 = vmatprep.subr.bf16.mxu0 %v4053_v56  ;;  %3831 = vmatprep.subr.bf16.mxu1 %v4219_v0 }
 0xc09   :  { %2936 = vmatpush1.bf16.msra.mxu0 %v4051_v38  ;;  %3832 = vmatpush3.bf16.msra.mxu1 %v4054_v12 }
 0xc0a   :  { %2937 = vmatprep.subr.bf16.mxu0 %v4057_v39  ;;  %3833 = vmatprep.subr.bf16.mxu1 %v4219_v0 }
 0xc0d   :  { %2938 = vmatpush1.bf16.msra.mxu0 %v4055_v60  ;;  %3834 = vmatpush3.bf16.msra.mxu1 %v4058_v18 }
 0xc0e   :  { %2939 = vmatprep.subr.bf16.mxu0 %v4061_v49  ;;  %3835 = vmatprep.subr.bf16.mxu1 %v4219_v0 }
 0xc11   :  { %2940 = vmatpush1.bf16.msra.mxu0 %v4059_v22  ;;  %3836 = vmatpush3.bf16.msra.mxu1 %v4062_v57 }
 0xc12   :  { %2941 = vmatprep.subr.bf16.mxu0 %v4065_v46  ;;  %3837 = vmatprep.subr.bf16.mxu1 %v4219_v0 }
 0xc15   :  { %2942 = vmatpush1.bf16.msra.mxu0 %v4063_v36  ;;  %3838 = vmatpush3.bf16.msra.mxu1 %v4066_v5  ;;  %v2534_v5 = vrot.slane %v3346_v1, %v4645_v32 }
 0xc16   :  { %2943 = vmatprep.subr.bf16.mxu0 %v4069_v59  ;;  %3839 = vmatprep.subr.bf16.mxu1 %v4219_v0  ;;  %v3371_v0 = vld [vmem:[%s4814_s8 + $0x21] sm:$0x7] }
 0xc17   :  { %v2793_v26 = vrot.slane %v3371_v0, %v4638_v29  ;;  %v2797_v46 = vrot.slane %v3371_v0, %v4645_v32 }
 0xc19   :  { %2944 = vmatpush1.bf16.msra.mxu0 %v4067_v14  ;;  %3840 = vmatpush3.bf16.msra.mxu1 %v4070_v61 }
 0xc1c   :  { %2962 = vmatmul.mubr.bf16.vlgmr.msra.gmra.mxu0 %v4659_v2  ;;  %3842 = vmatmul.mubr.bf16.vlgmr.msra.gmra.mxu1 %v4659_v2  ;;  %v2789_v2 = vrot.slane %v3371_v0, %v4364_v55 }
 0xcbc   :  { %v4773_v62 = vpop.f32.mrf.mxu1  ;;  %v2700_v44 = vpop.f32.mrf.mxu0 }
 0xcbd   :  { %v2701_v11 = vadd.f32 %v2700_v44, %v2526_v6 }
 0xcbe   :  { %v3823_v30 = vpop.f32.mrf.mxu1  ;;  %v2702_v16 = vpop.f32.mrf.mxu0 }
 0xcbf   :  { %v2703_v31 = vadd.f32 %v2702_v16, %v2530_v10 }
 0xcc0   :  { %v4775_v58 = vpop.f32.mrf.mxu1  ;;  %v2704_v45 = vpop.f32.mrf.mxu0 }
 0xcc1   :  { %v2705_v17 = vadd.f32 %v2704_v45, %v2526_v6 }
 0xcc2   :  { %v3824_v63 = vpop.f32.mrf.mxu1  ;;  %v2706_v7 = vpop.f32.mrf.mxu0 }
 0xcc3   :  { %v2707_v43 = vadd.f32 %v2706_v7, %v2530_v10  ;;  %v2744_v63 = vadd.f32 %v4773_v62, %v2534_v5  ;;  %v2747_v7 = vadd.f32 %v4775_v58, %v2534_v5 }
 0xcdc   :  { %v2963_v3 = vpop.f32.mrf.mxu0  ;;  %v3006_v4 = vpop.f32.mrf.mxu1 }
 0xcdd   :  { %v2964_v15 = vadd.f32 %v2963_v3, %v2789_v2  ;;  %v3007_v14 = vadd.f32 %v3006_v4, %v2797_v46 }
 0xcde   :  { %v2965_v21 = vpop.f32.mrf.mxu0  ;;  %v3843_v23 = vpop.f32.mrf.mxu1 }
 0xcdf   :  { %v3013_v25 = vadd.f32 %v2964_v15, %v2701_v11  ;;  %v2966_v33 = vadd.f32 %v2965_v21, %v2793_v26 }
 0xce0   :  { %v2967_v9 = vpop.f32.mrf.mxu0  ;;  %v3009_v13 = vpop.f32.mrf.mxu1 }
 0xce1   :  { %v3015_v20 = vand.u32 2147483647, %v3013_v25  ;;  %v3035_v34 = vadd.f32 %v2966_v33, %v2703_v31  ;;  %v2968_v35 = vadd.f32 %v2967_v9, %v2789_v2  ;;  %vm3029_vm0 = vcmp.ge.f32.partialorder %v3013_v25, 0.0 }
 0xce2   :  { %v2969_v37 = vpop.f32.mrf.mxu0  ;;  %v3844_v40 = vpop.f32.mrf.mxu1  ;;  %v3010_v6 = vadd.f32 %v3009_v13, %v2797_v46 }
 0xce3   :  { %v3017_v41 = vsub.f32 0.0, %v3015_v20  ;;  %v3037_v42 = vand.u32 2147483647, %v3035_v34  ;;  %v3014_v29 = vadd.f32 %v2968_v35, %v2705_v17  ;;  %v2970_v47 = vadd.f32 %v2969_v37, %v2793_v26 }
 0xce4   :  { %vm3051_vm6 = vcmp.ge.f32.partialorder %v3035_v34, 0.0 }
 0xce5   :  { %v3019_v28 = vmul.f32 1.442695, %v3017_v41  ;;  %v3039_v48 = vsub.f32 0.0, %v3037_v42  ;;  %v3016_v50 = vand.u32 2147483647, %v3014_v29  ;;  %v3036_v19 = vadd.f32 %v2970_v47, %v2707_v43 }
 0xce6   :  { %vm3030_vm5 = vcmp.ge.f32.partialorder %v3014_v29, 0.0 }
 0xce7   :  { %4123 = vpow2.f32 %v3019_v28  ;;  %v3018_v54 = vsub.f32 0.0, %v3016_v50  ;;  %v3038_v53 = vand.u32 2147483647, %v3036_v19  ;;  %v3041_v27 = vmul.f32 1.442695, %v3039_v48 }
 0xce8   :  { %vm3052_vm7 = vcmp.ge.f32.partialorder %v3036_v19, 0.0 }
 0xce9   :  { %v3021_v52 = vmul.f32 1.442695, %v3018_v54  ;;  %v3040_v24 = vsub.f32 0.0, %v3038_v53 }
 0xceb   :  { %4125 = vpow2.f32 %v3021_v52  ;;  %v3043_v56 = vmul.f32 1.442695, %v3040_v24 }
 0xcec   :  { %4127 = vpow2.f32 %v3041_v27 }
 0xced   :  { %4129 = vpow2.f32 %v3043_v56 }
 0xcf4   :  { %v4124_v38 = vpop.eup %4123 }
 0xcf5   :  { %v3023_v12 = vadd.f32 1.0, %v4124_v38 }
 0xcf7   :  { %4131 = vrcp.f32 %v3023_v12 }
 0xcf8   :  { %v4126_v39 = vpop.eup %4125 }
 0xcf9   :  { %v3024_v60 = vadd.f32 1.0, %v4126_v39  ;;  %v4128_v18 = vpop.eup %4127 }
 0xcfa   :  { %v3045_v49 = vadd.f32 1.0, %v4128_v18  ;;  %v4130_v22 = vpop.eup %4129 }
 0xcfb   :  { %4133 = vrcp.f32 %v3024_v60  ;;  %v3046_v57 = vadd.f32 1.0, %v4130_v22  ;;  %v3397_v60 = vld [vmem:[%s4814_s8 + $0xf] sm:$0x7] }
 0xcfc   :  { %4135 = vrcp.f32 %v3045_v49  ;;  %v3114_v46 = vrot.slane %v3397_v60, %v4364_v55 }
 0xcfd   :  { %4137 = vrcp.f32 %v3046_v57 }
 0xd04   :  { %v4132_v36 = vpop.eup %4131 }
 0xd05   :  { %v3031_v59 = vmul.f32 %v4132_v36, %v4124_v38 }
 0xd07   :  { %v3033_v61 = vsel %vm3029_vm0, %v4132_v36, %v3031_v59 }
 0xd08   :  { %v4134_v30 = vpop.eup %4133  ;;  %v3057_v44 = vmul.f32 %v3033_v61, %v3007_v14 }
 0xd09   :  { %v3032_v16 = vmul.f32 %v4134_v30, %v4126_v39  ;;  %v4136_v10 = vpop.eup %4135  ;;  %v3396_v39 = vld [vmem:[%s4814_s8 + $0xc] sm:$0x7]  ;;  %s4187_s8 = scalar_lea.vmem %s3128_s11, 256 }
 0xd0a   :  { %v3059_v45 = vadd.f32 %v3057_v44, %v2744_v63  ;;  %v3053_v1 = vmul.f32 %v4136_v10, %v4128_v18  ;;  %v4138_v26 = vpop.eup %4137  ;;  %v3104_v18 = vrot.slane %v3396_v39, %v4364_v55  ;;  %p4188_p10 = scmp.ne.s32.totalorder %s3128_s11, %s4187_s8  ;;  %p4193_p12 = scmp.lt.s32.totalorder %s4187_s8, %s4187_s8 }
 0xd0b   :  { %v3034_v2 = vsel %vm3030_vm5, %v4134_v30, %v3032_v16  ;;  %v3054_v4 = vmul.f32 %v4138_v26, %v4130_v22 }
 0xd0c   :  { %4139 = vtanh.f32 %v3059_v45  ;;  %v3058_v0 = vmul.f32 %v3034_v2, %v3010_v6  ;;  %v3055_v3 = vsel %vm3051_vm6, %v4136_v10, %v3053_v1  ;;  %p4194_p13 = por %p4193_p12, %p4192_p11 }
 0xd0d   :  { %v3063_v11 = vsub.f32 1.0, %v3055_v3  ;;  %v3056_v15 = vsel %vm3052_vm7, %v4138_v26, %v3054_v4  ;;  %v3067_v23 = vmul.f32 %v3055_v3, %v4653_v8 }
 0xd0e   :  { %v3060_v32 = vadd.f32 %v3058_v0, %v2747_v7  ;;  %v3064_v31 = vsub.f32 1.0, %v3056_v15  ;;  %v3068_v9 = vmul.f32 %v3056_v15, %v4655_v51  ;;  %p4195_p0 = pnand %p4194_p13, %p4188_p10 }
 0xd10   :  { %4141 = vtanh.f32 %v3060_v32 }
 0xd19   :  { %v4140_v62 = vpop.eup %4139 }
 0xd1a   :  { %v3065_v21 = vmul.f32 %v4140_v62, %v3063_v11 }
 0xd1c   :  { %v3069_v58 = vadd.f32 %v3067_v23, %v3065_v21 }
 0xd1d   :  { %v4142_v25 = vpop.eup %4141 }
 0xd1e   :  { %v3066_v33 = vmul.f32 %v4142_v25, %v3064_v31  ;;  %v3071_v17 = vmax.f32 %v3069_v58, 0.0 }
 0xd20   :  { %v3070_v13 = vadd.f32 %v3068_v9, %v3066_v33 }
 0xd22   :  { %v3072_v20 = vmax.f32 %v3070_v13, 0.0 }
 0xd24   :  { %v3073_v35 = vadd.f32 %v3072_v20, %v3071_v17 }
 0xd26   :  { %v3074_v34 = vrot.slane %v3073_v35, 4 }
 0xd28   :  { %v3075_v37 = vadd.f32 %v3074_v34, %v3073_v35 }
 0xd2a   :  { %v3076_v40 = vrot.slane %v3075_v37, 2 }
 0xd2c   :  { %v3077_v41 = vadd.f32 %v3076_v40, %v3075_v37 }
 0xd2e   :  { %v3078_v42 = vrot.slane %v3077_v41, 1 }
 0xd30   :  { %v3079_v29 = vadd.f32 %v3078_v42, %v3077_v41 }
 0xd32   :  { %v3081_v43 = vmul.f32 0.0625, %v3079_v29 }
 0xd34   :  { %v3082_v47 = vsub.f32 %v3071_v17, %v3081_v43  ;;  %v3083_v28 = vsub.f32 %v3072_v20, %v3081_v43 }
 0xd36   :  { %v3084_v48 = vmul.f32 %v3082_v47, %v3082_v47  ;;  %v3085_v50 = vmul.f32 %v3083_v28, %v3083_v28 }
 0xd38   :  { %v3086_v19 = vadd.f32 %v3085_v50, %v3084_v48 }
 0xd3a   :  { %v3087_v54 = vrot.slane %v3086_v19, 4 }
 0xd3c   :  { %v3088_v53 = vadd.f32 %v3087_v54, %v3086_v19 }
 0xd3e   :  { %v3089_v27 = vrot.slane %v3088_v53, 2 }
 0xd40   :  { %v3090_v52 = vadd.f32 %v3089_v27, %v3088_v53 }
 0xd42   :  { %v3091_v24 = vrot.slane %v3090_v52, 1 }
 0xd44   :  { %v3092_v56 = vadd.f32 %v3091_v24, %v3090_v52 }
 0xd46   :  { %v3093_v38 = vmul.f32 0.0625, %v3092_v56 }
 0xd48   :  { %v3094_v12 = vadd.f32 1e-05, %v3093_v38 }
 0xd4a   :  { %4143 = vrsqrt.f32 %v3094_v12 }
 0xd57   :  { %v4144_v49 = vpop.eup %4143 }
 0xd58   :  { %v3097_v22 = vmul.f32 %v4144_v49, %v3083_v28  ;;  %v3096_v57 = vmul.f32 %v4144_v49, %v3082_v47 }
 0xd5a   :  { %v3106_v36 = vmul.f32 %v3104_v18, %v3096_v57  ;;  %v3107_v5 = vmul.f32 %v3104_v18, %v3097_v22 }
 0xd5c   :  { %v3116_v59 = vadd.f32 %v3114_v46, %v3106_v36  ;;  %v3117_v14 = vadd.f32 %v3114_v46, %v3107_v5 }
 0xd5e   :  { %v3118_v61 = vadd.f32 %v3116_v59, %v4653_v8  ;;  %v3119_v30 = vadd.f32 %v3117_v14, %v4655_v51 }
 0xd60   :  { %3120 = vst [vmem:[#allocation7] sm:$0xff] %v3118_v61  ;;  %3121 = vst [vmem:[#allocation7 + $0x8] sm:$0xff] %v3119_v30 }
 0xd61   :  { %4198 = shalt.err (!%p4195_p0)
}
 0xd62   :  { %s4226_s12 = smov 128   ;;  %s4227_s13 = smov 8  }
 0xd63   :  { %3133 = dma.vmem_to_hbm [thread:$0]  %s3128_s11, 256, %s4815_s9, [#allocation4], %s4226_s12, %s4226_s12, %s4227_s13  }
 0xd64   :  { %4211 = dma.done.wait [#allocation4], 256  }
 0xd65   :  { %4212 = vsyncadd [#allocation4], 4294967040 }
 0xd66   :  { %3137 = vsyncpa [#allocation3], 1 }
 0xd67   :  { %3138 = vsyncpa [#allocation6], 1 }
 0xd68   :  { %3139 = vsyncpa [#allocation4], 1 }

</bundles_post_ra>
